<compile_context>
chip_gen: v7x
topology: tpu7x:2x2x1
jax: 0.10.0
libtpu: 0.0.40
codegen_flags: <defaults>
</compile_context>

<pallas_src>
import functools

import jax
import jax.numpy as jnp
from jax.experimental import pallas as pl
from jax.experimental.pallas import tpu as pltpu


def _mean_last_two(t):
    # mean over axes (1, 2) as two single-axis reductions (keepdims).
    return jnp.mean(jnp.mean(t, axis=2, keepdims=True), axis=1, keepdims=True)


def network_kernel(
    x_ref,      # (B, S, 5)  raw price features
    vec_ref,    # (8, S)     rows: wnp, bnp, wp, bp, summed-symbol, 0, 0, 0
    wqkv_ref,   # (E, 9, 3*H*A)  rows 0..7 fused QKV weight, row 8 fused bias
    w1s_ref,    # (E, 9, HID)    rows 0..7 W1, row 8 b1
    m8s_ref,    # (E, H*A+2+HID+4*S, 8)  Wo | bo | b2 | W2 | ln1g | ln1b | ln2g | ln2b
    head_ref,   # (S+73, 50)  wf1 | bf1 | wf2(pad) | bf2(pad) | wf3(pad) | bf3(pad)
    out_ref,    # (B, 8)      column 0 = prediction
    *, num_heads, attn_dim,
):
    f32 = jnp.float32
    x5 = x_ref[...]                               # (B, S, 5)
    B, S, _ = x5.shape
    D = 8
    H, A = num_heads, attn_dim
    HA = H * A
    E = wqkv_ref.shape[0]
    HID = w1s_ref.shape[2]
    BS = B * S

    # ---------------- Time2Vector + symbol embedding -------------------------
    vec = vec_ref[...]                            # (8, S)
    xm = jnp.mean(x5[:, :, 0:4], axis=-1)         # (B, S)  torch: inputs[:, :, 0:4]
    t_np = xm * vec[0:1, :] + vec[1:2, :]         # (B, S)
    t_p = jnp.sin(xm * vec[2:3, :] + vec[3:4, :])  # (B, S)
    sym = vec[4:5, :]                             # (1, S)

    # 5 -> 8 lane embedding via a tiny in-kernel selection matmul (no HBM pad).
    r8 = jax.lax.broadcasted_iota(jnp.int32, (D, D), 0)
    c8 = jax.lax.broadcasted_iota(jnp.int32, (D, D), 1)
    sel = (r8 == c8).astype(f32)[0:5, :]          # (5, 8) identity into lanes 0..4
    h = jnp.dot(x5.reshape(BS, 5), sel,
                preferred_element_type=f32).reshape(B, S, D)
    lane8 = jax.lax.broadcasted_iota(jnp.int32, (B, S, D), 2)
    h = jnp.where(lane8 == 5, sym[:, :, None], h)
    h = jnp.where(lane8 == 6, t_np[:, :, None], h)
    h = jnp.where(lane8 == 7, t_p[:, :, None], h)

    # row offsets inside the per-encoder "dim-8" slab
    bo_row = HA
    b2_row = HA + 1
    w2_off = HA + 2
    ln1g_off = w2_off + HID
    ln1b_off = ln1g_off + S
    ln2g_off = ln1b_off + S
    ln2b_off = ln2g_off + S

    scale = 1.0 / float(A) ** 0.5
    eps = 1e-5
    lane_ha = jax.lax.broadcasted_iota(jnp.int32, (B, S, HA), 2)

    # ---------------- stacked transformer encoders ---------------------------
    for e in range(E):
        h2 = h.reshape(BS, D)

        # multi-head attention: ONE fused QKV matmul + ONE output matmul.
        qkv = (jnp.dot(h2, wqkv_ref[e, 0:D, :], preferred_element_type=f32)
               + wqkv_ref[e, D:D + 1, :])                       # (BS, 3*HA)
        v = qkv[:, 2 * HA:3 * HA].reshape(B, S, HA)             # all heads, concat layout
        ctx = jnp.zeros((B, S, HA), f32)
        for hd in range(H):
            lo = hd * A
            qh = qkv[:, lo:lo + A].reshape(B, S, A)
            kh = qkv[:, HA + lo:HA + lo + A].reshape(B, S, A)
            s = jnp.einsum('bqa,bka->bqk', qh, kh,
                           preferred_element_type=f32) * scale  # (B, S, S)
            s = s - jnp.max(s, axis=-1, keepdims=True)
            p = jnp.exp(s)
            p = p * pl.reciprocal(jnp.sum(p, axis=-1, keepdims=True), approx=True)
            # write this head's context straight into its own lane range of ctx
            vh = jnp.where((lane_ha >= lo) & (lane_ha < lo + A), v, 0.0)
            ctx = ctx + jnp.einsum('bqk,bkc->bqc', p, vh,
                                   preferred_element_type=f32)
        mha = (jnp.dot(ctx.reshape(BS, HA), m8s_ref[e, 0:HA, :],
                       preferred_element_type=f32)
               + m8s_ref[e, bo_row:bo_row + 1, :]).reshape(B, S, D)

        # residual + LayerNorm over (seq_len, 8)
        y = h + mha
        mu = _mean_last_two(y)
        dev = y - mu
        var = _mean_last_two(dev * dev)
        y = (dev * jax.lax.rsqrt(var + eps)
             * m8s_ref[e, ln1g_off:ln1g_off + S, :]
             + m8s_ref[e, ln1b_off:ln1b_off + S, :])

        # position-wise FFN
        y2 = y.reshape(BS, D)
        f1 = jnp.maximum(
            jnp.dot(y2, w1s_ref[e, 0:D, :], preferred_element_type=f32)
            + w1s_ref[e, D:D + 1, :], 0.0)
        f2 = (jnp.dot(f1, m8s_ref[e, w2_off:w2_off + HID, :],
                      preferred_element_type=f32)
              + m8s_ref[e, b2_row:b2_row + 1, :])
        z = f2.reshape(B, S, D) + y

        mu = _mean_last_two(z)
        dev = z - mu
        var = _mean_last_two(dev * dev)
        h = (dev * jax.lax.rsqrt(var + eps)
             * m8s_ref[e, ln2g_off:ln2g_off + S, :]
             + m8s_ref[e, ln2b_off:ln2b_off + S, :])

    # ---------------- AvgPool1d(kernel_size=7) over the feature axis ---------
    # PyTorch AvgPool1d sees (N=B, C=S, L=8) -> single window = mean of lanes 0..6
    pooled = jnp.mean(h[:, :, 0:7], axis=-1)                    # (B, S)

    # ---------------- final MLP head (S -> 50 -> 20 -> 1) --------------------
    o = jnp.maximum(
        jnp.dot(pooled, head_ref[0:S, :], preferred_element_type=f32)
        + head_ref[S:S + 1, :], 0.0)                            # (B, 50)
    o = jnp.maximum(
        jnp.dot(o, head_ref[S + 1:S + 51, 0:20], preferred_element_type=f32)
        + head_ref[S + 51:S + 52, 0:20], 0.0)                   # (B, 20)
    o = (jnp.dot(o, head_ref[S + 52:S + 72, 0:1], preferred_element_type=f32)
         + head_ref[S + 72:S + 73, 0:1])                        # (B, 1)

    # lane-padded store: column 0 is the prediction, wrapper slices it back out
    out_ref[...] = jnp.broadcast_to(o, (B, D)).astype(out_ref.dtype)


def init_params(key, seq_len, num_encoders, num_heads, attn_dim, hidden_size):
    ks = iter(jax.random.split(key, 32))
    nrm = lambda shape, s=0.1: (s * jax.random.normal(next(ks), shape)).astype(jnp.float32)
    E, H, A, S, HID = num_encoders, num_heads, attn_dim, seq_len, hidden_size
    return dict(
        emb=nrm((26, S), 1.0),
        wnp=nrm((S,), 1.0), bnp=nrm((S,), 1.0),
        wp=nrm((S,), 1.0), bp=nrm((S,), 1.0),
        wq=nrm((E, H, 8, A)), bq=nrm((E, H, 1, A)),
        wk=nrm((E, H, 8, A)), bk=nrm((E, H, 1, A)),
        wv=nrm((E, H, 8, A)), bv=nrm((E, H, 1, A)),
        wo=nrm((E, H * A, 8)), bo=nrm((E, 1, 8)),
        ln1g=jnp.ones((E, S, 8), jnp.float32), ln1b=jnp.zeros((E, S, 8), jnp.float32),
        ln2g=jnp.ones((E, S, 8), jnp.float32), ln2b=jnp.zeros((E, S, 8), jnp.float32),
        w1=nrm((E, 8, HID)), b1=nrm((E, 1, HID)),
        w2=nrm((E, HID, 8)), b2=nrm((E, 1, 8)),
        wf1=nrm((S, 50)), bf1=nrm((1, 50)),
        wf2=nrm((50, 20)), bf2=nrm((1, 20)),
        wf3=nrm((20, 1)), bf3=nrm((1, 1)),
    )


def pack_params(p):
    """Pack per-module parameters into a few VMEM-friendly slabs (done once)."""
    E, H, _, A = p["wq"].shape
    HA = H * A

    def fuse_w(w):   # (E, H, 8, A) -> (E, 8, H*A), head-major columns
        return jnp.transpose(w, (0, 2, 1, 3)).reshape(E, 8, HA)

    def fuse_b(b):   # (E, H, 1, A) -> (E, 1, H*A)
        return jnp.transpose(b, (0, 2, 1, 3)).reshape(E, 1, HA)

    wqkv = jnp.concatenate(
        [jnp.concatenate([fuse_w(p["wq"]), fuse_w(p["wk"]), fuse_w(p["wv"])], axis=2),
         jnp.concatenate([fuse_b(p["bq"]), fuse_b(p["bk"]), fuse_b(p["bv"])], axis=2)],
        axis=1)                                                   # (E, 9, 3*HA)
    w1s = jnp.concatenate([p["w1"], p["b1"]], axis=1)             # (E, 9, HID)
    m8s = jnp.concatenate(
        [p["wo"], p["bo"], p["b2"], p["w2"],
         p["ln1g"], p["ln1b"], p["ln2g"], p["ln2b"]], axis=1)     # (E, HA+2+HID+4S, 8)

    def padw(a, w=50):
        return jnp.pad(a, ((0, 0), (0, w - a.shape[1])))
    heads = jnp.concatenate(
        [padw(p["wf1"]), padw(p["bf1"]), padw(p["wf2"]), padw(p["bf2"]),
         padw(p["wf3"]), padw(p["bf3"])], axis=0)                 # (S+73, 50)

    t2v = jnp.stack([p["wnp"], p["bnp"], p["wp"], p["bp"]], axis=0)  # (4, S)
    return dict(emb=p["emb"], t2v=t2v, wqkv=wqkv, w1s=w1s, m8s=m8s, heads=heads)


@functools.partial(jax.jit, static_argnames=("symbol", "num_heads", "attn_dim"))
def network_forward(packed, inputs, *, symbol: str, num_heads: int, attn_dim: int):
    B, S, _ = inputs.shape
    # host/JAX glue: static symbol string -> embedding indices -> summed row
    idx = jnp.array([ord(c) - 97 if c.islower() else ord(c) - 65 for c in symbol],
                    dtype=jnp.int32)
    sym = jnp.sum(packed["emb"][idx], axis=0, keepdims=True)            # (1, S)
    vec = jnp.concatenate([packed["t2v"], sym,
                           jnp.zeros((3, S), jnp.float32)], axis=0)     # (8, S)

    kernel = functools.partial(network_kernel,
                               num_heads=num_heads, attn_dim=attn_dim)
    vmem = pl.BlockSpec(memory_space=pltpu.MemorySpace.VMEM)
    out8 = pl.pallas_call(
        kernel,
        out_shape=jax.ShapeDtypeStruct((B, 8), jnp.float32),
        in_specs=[vmem] * 6,
        out_specs=vmem,
    )(inputs.astype(jnp.float32), vec,
      packed["wqkv"], packed["w1s"], packed["m8s"], packed["heads"])
    return out8[:, :1]                                                  # (B, 1)


if __name__ == "__main__":
    key = jax.random.PRNGKey(0)
    batch, seq_len = 2, 8
    num_encoders, num_heads, attn_dim, hidden_size = 2, 3, 4, 32

    params = init_params(key, seq_len, num_encoders, num_heads, attn_dim,
                         hidden_size)
    packed = pack_params(params)
    inputs = jax.random.normal(jax.random.fold_in(key, 999),
                               (batch, seq_len, 5), dtype=jnp.float32)

    out = network_forward(packed, inputs, symbol="GOOG",
                          num_heads=num_heads, attn_dim=attn_dim)
    out = jax.block_until_ready(out)
    assert out.shape == (batch, 1) and out.dtype == jnp.float32
    print("KERNEL_OK")
</pallas_src>

<mosaic_0001>
module attributes {stable_mosaic.version = 11 : i64} {
  func.func @network_kernel(%arg0: memref<2x8x5xf32, #tpu.memory_space<vmem>>, %arg1: memref<8x8xf32, #tpu.memory_space<vmem>>, %arg2: memref<2x9x36xf32, #tpu.memory_space<vmem>>, %arg3: memref<2x9x32xf32, #tpu.memory_space<vmem>>, %arg4: memref<2x78x8xf32, #tpu.memory_space<vmem>>, %arg5: memref<81x50xf32, #tpu.memory_space<vmem>>, %arg6: memref<2x8xf32, #tpu.memory_space<vmem>>) attributes {dimension_semantics = [], scalar_prefetch = 0 : i64, scratch_operands = 0 : i64, tpu.core_type = #tpu.core_type<tc>} {
    %c0 = arith.constant 0 : index
    %c0_0 = arith.constant 0 : index
    %c0_1 = arith.constant 0 : index
    %0 = vector.load %arg0[%c0, %c0_0, %c0_1] : memref<2x8x5xf32, #tpu.memory_space<vmem>>, vector<2x8x5xf32>
    %c0_2 = arith.constant 0 : index
    %c0_3 = arith.constant 0 : index
    %1 = vector.load %arg1[%c0_2, %c0_3] : memref<8x8xf32, #tpu.memory_space<vmem>>, vector<8x8xf32>
    %2 = vector.extract_strided_slice %0 {offsets = [0, 0, 0], sizes = [2, 8, 4], strides = [1, 1, 1]} : vector<2x8x5xf32> to vector<2x8x4xf32>
    %cst = arith.constant dense<0.000000e+00> : vector<2x8xf32>
    %3 = vector.multi_reduction <add>, %2, %cst [2] : vector<2x8x4xf32> to vector<2x8xf32>
    %cst_4 = arith.constant 4.000000e+00 : f32
    %4 = vector.broadcast %cst_4 : f32 to vector<2x8xf32>
    %5 = arith.divf %3, %4 : vector<2x8xf32>
    %6 = vector.extract_strided_slice %1 {offsets = [0, 0], sizes = [1, 8], strides = [1, 1]} : vector<8x8xf32> to vector<1x8xf32>
    %7 = vector.broadcast %6 : vector<1x8xf32> to vector<2x8xf32>
    %8 = arith.mulf %5, %7 : vector<2x8xf32>
    %9 = vector.extract_strided_slice %1 {offsets = [1, 0], sizes = [1, 8], strides = [1, 1]} : vector<8x8xf32> to vector<1x8xf32>
    %10 = vector.broadcast %9 : vector<1x8xf32> to vector<2x8xf32>
    %11 = arith.addf %8, %10 : vector<2x8xf32>
    %12 = vector.extract_strided_slice %1 {offsets = [2, 0], sizes = [1, 8], strides = [1, 1]} : vector<8x8xf32> to vector<1x8xf32>
    %13 = vector.broadcast %12 : vector<1x8xf32> to vector<2x8xf32>
    %14 = arith.mulf %5, %13 : vector<2x8xf32>
    %15 = vector.extract_strided_slice %1 {offsets = [3, 0], sizes = [1, 8], strides = [1, 1]} : vector<8x8xf32> to vector<1x8xf32>
    %16 = vector.broadcast %15 : vector<1x8xf32> to vector<2x8xf32>
    %17 = arith.addf %14, %16 : vector<2x8xf32>
    %18 = math.sin %17 : vector<2x8xf32>
    %19 = vector.extract_strided_slice %1 {offsets = [4, 0], sizes = [1, 8], strides = [1, 1]} : vector<8x8xf32> to vector<1x8xf32>
    %20 = tpu.iota {dimensions = array<i32: 0>} : vector<8x8xi32>
    %21 = tpu.iota {dimensions = array<i32: 1>} : vector<8x8xi32>
    %22 = arith.cmpi eq, %20, %21 : vector<8x8xi32>
    %23 = arith.extui %22 : vector<8x8xi1> to vector<8x8xi32>
    %24 = arith.sitofp %23 : vector<8x8xi32> to vector<8x8xf32>
    %25 = vector.extract_strided_slice %24 {offsets = [0, 0], sizes = [5, 8], strides = [1, 1]} : vector<8x8xf32> to vector<5x8xf32>
    %26 = vector.shape_cast %0 : vector<2x8x5xf32> to vector<16x5xf32>
    %cst_5 = arith.constant dense<0.000000e+00> : vector<16x8xf32>
    %27 = tpu.matmul %26, %25, %cst_5 {dimension_numbers = #tpu.dot_dimension_numbers<[1], [0], [0], [1], [0, 0, 1, 1], [], []>} : vector<16x5xf32>, vector<5x8xf32>, vector<16x8xf32> -> vector<16x8xf32>
    %28 = vector.shape_cast %27 : vector<16x8xf32> to vector<2x8x8xf32>
    %29 = tpu.iota {dimensions = array<i32: 2>} : vector<2x8x8xi32>
    %c5_i32 = arith.constant 5 : i32
    %30 = vector.broadcast %c5_i32 : i32 to vector<2x8x8xi32>
    %31 = arith.cmpi eq, %29, %30 : vector<2x8x8xi32>
    %32 = vector.shape_cast %19 : vector<1x8xf32> to vector<1x8x1xf32>
    %33 = vector.shape_cast %32 : vector<1x8x1xf32> to vector<1x8x1xf32>
    %34 = vector.broadcast %33 : vector<1x8x1xf32> to vector<2x8x8xf32>
    %35 = arith.select %31, %34, %28 : vector<2x8x8xi1>, vector<2x8x8xf32>
    %c6_i32 = arith.constant 6 : i32
    %36 = vector.broadcast %c6_i32 : i32 to vector<2x8x8xi32>
    %37 = arith.cmpi eq, %29, %36 : vector<2x8x8xi32>
    %38 = vector.shape_cast %11 : vector<2x8xf32> to vector<2x8x1xf32>
    %39 = vector.shape_cast %38 : vector<2x8x1xf32> to vector<2x8x1xf32>
    %40 = vector.broadcast %39 : vector<2x8x1xf32> to vector<2x8x8xf32>
    %41 = arith.select %37, %40, %35 : vector<2x8x8xi1>, vector<2x8x8xf32>
    %c7_i32 = arith.constant 7 : i32
    %42 = vector.broadcast %c7_i32 : i32 to vector<2x8x8xi32>
    %43 = arith.cmpi eq, %29, %42 : vector<2x8x8xi32>
    %44 = vector.shape_cast %18 : vector<2x8xf32> to vector<2x8x1xf32>
    %45 = vector.shape_cast %44 : vector<2x8x1xf32> to vector<2x8x1xf32>
    %46 = vector.broadcast %45 : vector<2x8x1xf32> to vector<2x8x8xf32>
    %47 = arith.select %43, %46, %41 : vector<2x8x8xi1>, vector<2x8x8xf32>
    %48 = tpu.iota {dimensions = array<i32: 2>} : vector<2x8x12xi32>
    %49 = vector.shape_cast %47 : vector<2x8x8xf32> to vector<16x8xf32>
    %c0_6 = arith.constant 0 : index
    %c0_7 = arith.constant 0 : index
    %c0_8 = arith.constant 0 : index
    %50 = vector.load %arg2[%c0_6, %c0_7, %c0_8] : memref<2x9x36xf32, #tpu.memory_space<vmem>>, vector<1x8x36xf32>
    %51 = vector.shape_cast %50 : vector<1x8x36xf32> to vector<8x36xf32>
    %cst_9 = arith.constant dense<0.000000e+00> : vector<16x36xf32>
    %52 = tpu.matmul %49, %51, %cst_9 {dimension_numbers = #tpu.dot_dimension_numbers<[1], [0], [0], [1], [0, 0, 1, 1], [], []>} : vector<16x8xf32>, vector<8x36xf32>, vector<16x36xf32> -> vector<16x36xf32>
    %c0_10 = arith.constant 0 : index
    %c8 = arith.constant 8 : index
    %c0_11 = arith.constant 0 : index
    %53 = vector.load %arg2[%c0_10, %c8, %c0_11] : memref<2x9x36xf32, #tpu.memory_space<vmem>>, vector<1x1x36xf32>
    %54 = vector.shape_cast %53 : vector<1x1x36xf32> to vector<1x36xf32>
    %55 = vector.broadcast %54 : vector<1x36xf32> to vector<16x36xf32>
    %56 = arith.addf %52, %55 : vector<16x36xf32>
    %57 = vector.extract_strided_slice %56 {offsets = [0, 24], sizes = [16, 12], strides = [1, 1]} : vector<16x36xf32> to vector<16x12xf32>
    %58 = vector.shape_cast %57 : vector<16x12xf32> to vector<2x8x12xf32>
    %cst_12 = arith.constant 0.000000e+00 : f32
    %59 = vector.broadcast %cst_12 : f32 to vector<2x8x12xf32>
    %60 = vector.extract_strided_slice %56 {offsets = [0, 0], sizes = [16, 4], strides = [1, 1]} : vector<16x36xf32> to vector<16x4xf32>
    %61 = vector.shape_cast %60 : vector<16x4xf32> to vector<2x8x4xf32>
    %62 = vector.extract_strided_slice %56 {offsets = [0, 12], sizes = [16, 4], strides = [1, 1]} : vector<16x36xf32> to vector<16x4xf32>
    %63 = vector.shape_cast %62 : vector<16x4xf32> to vector<2x8x4xf32>
    "tpu.trace_start"() <{level = 10 : i32, message = "bqa,bka->bqk"}> : () -> ()
    %cst_13 = arith.constant dense<0.000000e+00> : vector<2x8x8xf32>
    %64 = tpu.matmul %61, %63, %cst_13 {dimension_numbers = #tpu.dot_dimension_numbers<[2], [2], [1], [1], [0, 0, 0, 1, 1, 1], [0], [0]>} : vector<2x8x4xf32>, vector<2x8x4xf32>, vector<2x8x8xf32> -> vector<2x8x8xf32>
    "tpu.trace_stop"() : () -> ()
    %cst_14 = arith.constant 5.000000e-01 : f32
    %65 = vector.broadcast %cst_14 : f32 to vector<2x8x8xf32>
    %66 = arith.mulf %64, %65 : vector<2x8x8xf32>
    %cst_15 = arith.constant dense<0xFF800000> : vector<2x8xf32>
    %67 = vector.multi_reduction <maximumf>, %66, %cst_15 [2] : vector<2x8x8xf32> to vector<2x8xf32>
    %68 = vector.shape_cast %67 : vector<2x8xf32> to vector<2x8x1xf32>
    %69 = vector.broadcast %68 : vector<2x8x1xf32> to vector<2x8x8xf32>
    %70 = arith.subf %66, %69 : vector<2x8x8xf32>
    %71 = math.exp %70 : vector<2x8x8xf32>
    %cst_16 = arith.constant dense<0.000000e+00> : vector<2x8xf32>
    %72 = vector.multi_reduction <add>, %71, %cst_16 [2] : vector<2x8x8xf32> to vector<2x8xf32>
    %73 = vector.shape_cast %72 : vector<2x8xf32> to vector<2x8x1xf32>
    %74 = tpu.reciprocal %73 {approx = true} : vector<2x8x1xf32> -> vector<2x8x1xf32>
    %75 = vector.broadcast %74 : vector<2x8x1xf32> to vector<2x8x8xf32>
    %76 = arith.mulf %71, %75 : vector<2x8x8xf32>
    %c0_i32 = arith.constant 0 : i32
    %77 = vector.broadcast %c0_i32 : i32 to vector<2x8x12xi32>
    %78 = arith.cmpi sge, %48, %77 : vector<2x8x12xi32>
    %c4_i32 = arith.constant 4 : i32
    %79 = vector.broadcast %c4_i32 : i32 to vector<2x8x12xi32>
    %80 = arith.cmpi slt, %48, %79 : vector<2x8x12xi32>
    %81 = arith.andi %78, %80 : vector<2x8x12xi1>
    %cst_17 = arith.constant 0.000000e+00 : f32
    %82 = vector.broadcast %cst_17 : f32 to vector<2x8x12xf32>
    %83 = arith.select %81, %58, %82 : vector<2x8x12xi1>, vector<2x8x12xf32>
    "tpu.trace_start"() <{level = 10 : i32, message = "bqk,bkc->bqc"}> : () -> ()
    %cst_18 = arith.constant dense<0.000000e+00> : vector<2x8x12xf32>
    %84 = tpu.matmul %76, %83, %cst_18 {dimension_numbers = #tpu.dot_dimension_numbers<[2], [1], [1], [2], [0, 0, 0, 1, 1, 2], [0], [0]>} : vector<2x8x8xf32>, vector<2x8x12xf32>, vector<2x8x12xf32> -> vector<2x8x12xf32>
    "tpu.trace_stop"() : () -> ()
    %85 = arith.addf %59, %84 : vector<2x8x12xf32>
    %86 = vector.extract_strided_slice %56 {offsets = [0, 4], sizes = [16, 4], strides = [1, 1]} : vector<16x36xf32> to vector<16x4xf32>
    %87 = vector.shape_cast %86 : vector<16x4xf32> to vector<2x8x4xf32>
    %88 = vector.extract_strided_slice %56 {offsets = [0, 16], sizes = [16, 4], strides = [1, 1]} : vector<16x36xf32> to vector<16x4xf32>
    %89 = vector.shape_cast %88 : vector<16x4xf32> to vector<2x8x4xf32>
    "tpu.trace_start"() <{level = 10 : i32, message = "bqa,bka->bqk"}> : () -> ()
    %cst_19 = arith.constant dense<0.000000e+00> : vector<2x8x8xf32>
    %90 = tpu.matmul %87, %89, %cst_19 {dimension_numbers = #tpu.dot_dimension_numbers<[2], [2], [1], [1], [0, 0, 0, 1, 1, 1], [0], [0]>} : vector<2x8x4xf32>, vector<2x8x4xf32>, vector<2x8x8xf32> -> vector<2x8x8xf32>
    "tpu.trace_stop"() : () -> ()
    %cst_20 = arith.constant 5.000000e-01 : f32
    %91 = vector.broadcast %cst_20 : f32 to vector<2x8x8xf32>
    %92 = arith.mulf %90, %91 : vector<2x8x8xf32>
    %cst_21 = arith.constant dense<0xFF800000> : vector<2x8xf32>
    %93 = vector.multi_reduction <maximumf>, %92, %cst_21 [2] : vector<2x8x8xf32> to vector<2x8xf32>
    %94 = vector.shape_cast %93 : vector<2x8xf32> to vector<2x8x1xf32>
    %95 = vector.broadcast %94 : vector<2x8x1xf32> to vector<2x8x8xf32>
    %96 = arith.subf %92, %95 : vector<2x8x8xf32>
    %97 = math.exp %96 : vector<2x8x8xf32>
    %cst_22 = arith.constant dense<0.000000e+00> : vector<2x8xf32>
    %98 = vector.multi_reduction <add>, %97, %cst_22 [2] : vector<2x8x8xf32> to vector<2x8xf32>
    %99 = vector.shape_cast %98 : vector<2x8xf32> to vector<2x8x1xf32>
    %100 = tpu.reciprocal %99 {approx = true} : vector<2x8x1xf32> -> vector<2x8x1xf32>
    %101 = vector.broadcast %100 : vector<2x8x1xf32> to vector<2x8x8xf32>
    %102 = arith.mulf %97, %101 : vector<2x8x8xf32>
    %c4_i32_23 = arith.constant 4 : i32
    %103 = vector.broadcast %c4_i32_23 : i32 to vector<2x8x12xi32>
    %104 = arith.cmpi sge, %48, %103 : vector<2x8x12xi32>
    %c8_i32 = arith.constant 8 : i32
    %105 = vector.broadcast %c8_i32 : i32 to vector<2x8x12xi32>
    %106 = arith.cmpi slt, %48, %105 : vector<2x8x12xi32>
    %107 = arith.andi %104, %106 : vector<2x8x12xi1>
    %cst_24 = arith.constant 0.000000e+00 : f32
    %108 = vector.broadcast %cst_24 : f32 to vector<2x8x12xf32>
    %109 = arith.select %107, %58, %108 : vector<2x8x12xi1>, vector<2x8x12xf32>
    "tpu.trace_start"() <{level = 10 : i32, message = "bqk,bkc->bqc"}> : () -> ()
    %cst_25 = arith.constant dense<0.000000e+00> : vector<2x8x12xf32>
    %110 = tpu.matmul %102, %109, %cst_25 {dimension_numbers = #tpu.dot_dimension_numbers<[2], [1], [1], [2], [0, 0, 0, 1, 1, 2], [0], [0]>} : vector<2x8x8xf32>, vector<2x8x12xf32>, vector<2x8x12xf32> -> vector<2x8x12xf32>
    "tpu.trace_stop"() : () -> ()
    %111 = arith.addf %85, %110 : vector<2x8x12xf32>
    %112 = vector.extract_strided_slice %56 {offsets = [0, 8], sizes = [16, 4], strides = [1, 1]} : vector<16x36xf32> to vector<16x4xf32>
    %113 = vector.shape_cast %112 : vector<16x4xf32> to vector<2x8x4xf32>
    %114 = vector.extract_strided_slice %56 {offsets = [0, 20], sizes = [16, 4], strides = [1, 1]} : vector<16x36xf32> to vector<16x4xf32>
    %115 = vector.shape_cast %114 : vector<16x4xf32> to vector<2x8x4xf32>
    "tpu.trace_start"() <{level = 10 : i32, message = "bqa,bka->bqk"}> : () -> ()
    %cst_26 = arith.constant dense<0.000000e+00> : vector<2x8x8xf32>
    %116 = tpu.matmul %113, %115, %cst_26 {dimension_numbers = #tpu.dot_dimension_numbers<[2], [2], [1], [1], [0, 0, 0, 1, 1, 1], [0], [0]>} : vector<2x8x4xf32>, vector<2x8x4xf32>, vector<2x8x8xf32> -> vector<2x8x8xf32>
    "tpu.trace_stop"() : () -> ()
    %cst_27 = arith.constant 5.000000e-01 : f32
    %117 = vector.broadcast %cst_27 : f32 to vector<2x8x8xf32>
    %118 = arith.mulf %116, %117 : vector<2x8x8xf32>
    %cst_28 = arith.constant dense<0xFF800000> : vector<2x8xf32>
    %119 = vector.multi_reduction <maximumf>, %118, %cst_28 [2] : vector<2x8x8xf32> to vector<2x8xf32>
    %120 = vector.shape_cast %119 : vector<2x8xf32> to vector<2x8x1xf32>
    %121 = vector.broadcast %120 : vector<2x8x1xf32> to vector<2x8x8xf32>
    %122 = arith.subf %118, %121 : vector<2x8x8xf32>
    %123 = math.exp %122 : vector<2x8x8xf32>
    %cst_29 = arith.constant dense<0.000000e+00> : vector<2x8xf32>
    %124 = vector.multi_reduction <add>, %123, %cst_29 [2] : vector<2x8x8xf32> to vector<2x8xf32>
    %125 = vector.shape_cast %124 : vector<2x8xf32> to vector<2x8x1xf32>
    %126 = tpu.reciprocal %125 {approx = true} : vector<2x8x1xf32> -> vector<2x8x1xf32>
    %127 = vector.broadcast %126 : vector<2x8x1xf32> to vector<2x8x8xf32>
    %128 = arith.mulf %123, %127 : vector<2x8x8xf32>
    %c8_i32_30 = arith.constant 8 : i32
    %129 = vector.broadcast %c8_i32_30 : i32 to vector<2x8x12xi32>
    %130 = arith.cmpi sge, %48, %129 : vector<2x8x12xi32>
    %c12_i32 = arith.constant 12 : i32
    %131 = vector.broadcast %c12_i32 : i32 to vector<2x8x12xi32>
    %132 = arith.cmpi slt, %48, %131 : vector<2x8x12xi32>
    %133 = arith.andi %130, %132 : vector<2x8x12xi1>
    %cst_31 = arith.constant 0.000000e+00 : f32
    %134 = vector.broadcast %cst_31 : f32 to vector<2x8x12xf32>
    %135 = arith.select %133, %58, %134 : vector<2x8x12xi1>, vector<2x8x12xf32>
    "tpu.trace_start"() <{level = 10 : i32, message = "bqk,bkc->bqc"}> : () -> ()
    %cst_32 = arith.constant dense<0.000000e+00> : vector<2x8x12xf32>
    %136 = tpu.matmul %128, %135, %cst_32 {dimension_numbers = #tpu.dot_dimension_numbers<[2], [1], [1], [2], [0, 0, 0, 1, 1, 2], [0], [0]>} : vector<2x8x8xf32>, vector<2x8x12xf32>, vector<2x8x12xf32> -> vector<2x8x12xf32>
    "tpu.trace_stop"() : () -> ()
    %137 = arith.addf %111, %136 : vector<2x8x12xf32>
    %138 = vector.shape_cast %137 : vector<2x8x12xf32> to vector<16x12xf32>
    %c0_33 = arith.constant 0 : index
    %c0_34 = arith.constant 0 : index
    %c0_35 = arith.constant 0 : index
    %139 = vector.load %arg4[%c0_33, %c0_34, %c0_35] : memref<2x78x8xf32, #tpu.memory_space<vmem>>, vector<1x12x8xf32>
    %140 = vector.shape_cast %139 : vector<1x12x8xf32> to vector<12x8xf32>
    %cst_36 = arith.constant dense<0.000000e+00> : vector<16x8xf32>
    %141 = tpu.matmul %138, %140, %cst_36 {dimension_numbers = #tpu.dot_dimension_numbers<[1], [0], [0], [1], [0, 0, 1, 1], [], []>} : vector<16x12xf32>, vector<12x8xf32>, vector<16x8xf32> -> vector<16x8xf32>
    %c0_37 = arith.constant 0 : index
    %c12 = arith.constant 12 : index
    %c0_38 = arith.constant 0 : index
    %142 = vector.load %arg4[%c0_37, %c12, %c0_38] : memref<2x78x8xf32, #tpu.memory_space<vmem>>, vector<1x1x8xf32>
    %143 = vector.shape_cast %142 : vector<1x1x8xf32> to vector<1x8xf32>
    %144 = vector.broadcast %143 : vector<1x8xf32> to vector<16x8xf32>
    %145 = arith.addf %141, %144 : vector<16x8xf32>
    %146 = vector.shape_cast %145 : vector<16x8xf32> to vector<2x8x8xf32>
    %147 = arith.addf %47, %146 : vector<2x8x8xf32>
    %cst_39 = arith.constant dense<0.000000e+00> : vector<2x8xf32>
    %148 = vector.multi_reduction <add>, %147, %cst_39 [2] : vector<2x8x8xf32> to vector<2x8xf32>
    %149 = vector.shape_cast %148 : vector<2x8xf32> to vector<2x8x1xf32>
    %cst_40 = arith.constant 8.000000e+00 : f32
    %150 = vector.broadcast %cst_40 : f32 to vector<2x8x1xf32>
    %151 = arith.divf %149, %150 : vector<2x8x1xf32>
    %cst_41 = arith.constant dense<0.000000e+00> : vector<2x1xf32>
    %152 = vector.multi_reduction <add>, %151, %cst_41 [1] : vector<2x8x1xf32> to vector<2x1xf32>
    %153 = vector.shape_cast %152 : vector<2x1xf32> to vector<2x1x1xf32>
    %cst_42 = arith.constant 8.000000e+00 : f32
    %154 = vector.broadcast %cst_42 : f32 to vector<2x1x1xf32>
    %155 = arith.divf %153, %154 : vector<2x1x1xf32>
    %156 = vector.broadcast %155 : vector<2x1x1xf32> to vector<2x8x8xf32>
    %157 = arith.subf %147, %156 : vector<2x8x8xf32>
    %158 = arith.mulf %157, %157 : vector<2x8x8xf32>
    %cst_43 = arith.constant dense<0.000000e+00> : vector<2x8xf32>
    %159 = vector.multi_reduction <add>, %158, %cst_43 [2] : vector<2x8x8xf32> to vector<2x8xf32>
    %160 = vector.shape_cast %159 : vector<2x8xf32> to vector<2x8x1xf32>
    %cst_44 = arith.constant 8.000000e+00 : f32
    %161 = vector.broadcast %cst_44 : f32 to vector<2x8x1xf32>
    %162 = arith.divf %160, %161 : vector<2x8x1xf32>
    %cst_45 = arith.constant dense<0.000000e+00> : vector<2x1xf32>
    %163 = vector.multi_reduction <add>, %162, %cst_45 [1] : vector<2x8x1xf32> to vector<2x1xf32>
    %164 = vector.shape_cast %163 : vector<2x1xf32> to vector<2x1x1xf32>
    %cst_46 = arith.constant 8.000000e+00 : f32
    %165 = vector.broadcast %cst_46 : f32 to vector<2x1x1xf32>
    %166 = arith.divf %164, %165 : vector<2x1x1xf32>
    %cst_47 = arith.constant 9.99999974E-6 : f32
    %167 = vector.broadcast %cst_47 : f32 to vector<2x1x1xf32>
    %168 = arith.addf %166, %167 : vector<2x1x1xf32>
    %169 = math.rsqrt %168 : vector<2x1x1xf32>
    %170 = vector.broadcast %169 : vector<2x1x1xf32> to vector<2x8x8xf32>
    %171 = arith.mulf %157, %170 : vector<2x8x8xf32>
    %c0_48 = arith.constant 0 : index
    %c46 = arith.constant 46 : index
    %c0_49 = arith.constant 0 : index
    %172 = vector.load %arg4[%c0_48, %c46, %c0_49] : memref<2x78x8xf32, #tpu.memory_space<vmem>>, vector<1x8x8xf32>
    %173 = vector.shape_cast %172 : vector<1x8x8xf32> to vector<8x8xf32>
    %174 = vector.shape_cast %173 : vector<8x8xf32> to vector<1x8x8xf32>
    %175 = vector.broadcast %174 : vector<1x8x8xf32> to vector<2x8x8xf32>
    %176 = arith.mulf %171, %175 : vector<2x8x8xf32>
    %c0_50 = arith.constant 0 : index
    %c54 = arith.constant 54 : index
    %c0_51 = arith.constant 0 : index
    %177 = vector.load %arg4[%c0_50, %c54, %c0_51] : memref<2x78x8xf32, #tpu.memory_space<vmem>>, vector<1x8x8xf32>
    %178 = vector.shape_cast %177 : vector<1x8x8xf32> to vector<8x8xf32>
    %179 = vector.shape_cast %178 : vector<8x8xf32> to vector<1x8x8xf32>
    %180 = vector.broadcast %179 : vector<1x8x8xf32> to vector<2x8x8xf32>
    %181 = arith.addf %176, %180 : vector<2x8x8xf32>
    %182 = vector.shape_cast %181 : vector<2x8x8xf32> to vector<16x8xf32>
    %c0_52 = arith.constant 0 : index
    %c0_53 = arith.constant 0 : index
    %c0_54 = arith.constant 0 : index
    %183 = vector.load %arg3[%c0_52, %c0_53, %c0_54] : memref<2x9x32xf32, #tpu.memory_space<vmem>>, vector<1x8x32xf32>
    %184 = vector.shape_cast %183 : vector<1x8x32xf32> to vector<8x32xf32>
    %cst_55 = arith.constant dense<0.000000e+00> : vector<16x32xf32>
    %185 = tpu.matmul %182, %184, %cst_55 {dimension_numbers = #tpu.dot_dimension_numbers<[1], [0], [0], [1], [0, 0, 1, 1], [], []>} : vector<16x8xf32>, vector<8x32xf32>, vector<16x32xf32> -> vector<16x32xf32>
    %c0_56 = arith.constant 0 : index
    %c8_57 = arith.constant 8 : index
    %c0_58 = arith.constant 0 : index
    %186 = vector.load %arg3[%c0_56, %c8_57, %c0_58] : memref<2x9x32xf32, #tpu.memory_space<vmem>>, vector<1x1x32xf32>
    %187 = vector.shape_cast %186 : vector<1x1x32xf32> to vector<1x32xf32>
    %188 = vector.broadcast %187 : vector<1x32xf32> to vector<16x32xf32>
    %189 = arith.addf %185, %188 : vector<16x32xf32>
    %cst_59 = arith.constant 0.000000e+00 : f32
    %190 = vector.broadcast %cst_59 : f32 to vector<16x32xf32>
    %191 = arith.maximumf %189, %190 : vector<16x32xf32>
    %c0_60 = arith.constant 0 : index
    %c14 = arith.constant 14 : index
    %c0_61 = arith.constant 0 : index
    %192 = vector.load %arg4[%c0_60, %c14, %c0_61] : memref<2x78x8xf32, #tpu.memory_space<vmem>>, vector<1x32x8xf32>
    %193 = vector.shape_cast %192 : vector<1x32x8xf32> to vector<32x8xf32>
    %cst_62 = arith.constant dense<0.000000e+00> : vector<16x8xf32>
    %194 = tpu.matmul %191, %193, %cst_62 {dimension_numbers = #tpu.dot_dimension_numbers<[1], [0], [0], [1], [0, 0, 1, 1], [], []>} : vector<16x32xf32>, vector<32x8xf32>, vector<16x8xf32> -> vector<16x8xf32>
    %c0_63 = arith.constant 0 : index
    %c13 = arith.constant 13 : index
    %c0_64 = arith.constant 0 : index
    %195 = vector.load %arg4[%c0_63, %c13, %c0_64] : memref<2x78x8xf32, #tpu.memory_space<vmem>>, vector<1x1x8xf32>
    %196 = vector.shape_cast %195 : vector<1x1x8xf32> to vector<1x8xf32>
    %197 = vector.broadcast %196 : vector<1x8xf32> to vector<16x8xf32>
    %198 = arith.addf %194, %197 : vector<16x8xf32>
    %199 = vector.shape_cast %198 : vector<16x8xf32> to vector<2x8x8xf32>
    %200 = arith.addf %199, %181 : vector<2x8x8xf32>
    %cst_65 = arith.constant dense<0.000000e+00> : vector<2x8xf32>
    %201 = vector.multi_reduction <add>, %200, %cst_65 [2] : vector<2x8x8xf32> to vector<2x8xf32>
    %202 = vector.shape_cast %201 : vector<2x8xf32> to vector<2x8x1xf32>
    %cst_66 = arith.constant 8.000000e+00 : f32
    %203 = vector.broadcast %cst_66 : f32 to vector<2x8x1xf32>
    %204 = arith.divf %202, %203 : vector<2x8x1xf32>
    %cst_67 = arith.constant dense<0.000000e+00> : vector<2x1xf32>
    %205 = vector.multi_reduction <add>, %204, %cst_67 [1] : vector<2x8x1xf32> to vector<2x1xf32>
    %206 = vector.shape_cast %205 : vector<2x1xf32> to vector<2x1x1xf32>
    %cst_68 = arith.constant 8.000000e+00 : f32
    %207 = vector.broadcast %cst_68 : f32 to vector<2x1x1xf32>
    %208 = arith.divf %206, %207 : vector<2x1x1xf32>
    %209 = vector.broadcast %208 : vector<2x1x1xf32> to vector<2x8x8xf32>
    %210 = arith.subf %200, %209 : vector<2x8x8xf32>
    %211 = arith.mulf %210, %210 : vector<2x8x8xf32>
    %cst_69 = arith.constant dense<0.000000e+00> : vector<2x8xf32>
    %212 = vector.multi_reduction <add>, %211, %cst_69 [2] : vector<2x8x8xf32> to vector<2x8xf32>
    %213 = vector.shape_cast %212 : vector<2x8xf32> to vector<2x8x1xf32>
    %cst_70 = arith.constant 8.000000e+00 : f32
    %214 = vector.broadcast %cst_70 : f32 to vector<2x8x1xf32>
    %215 = arith.divf %213, %214 : vector<2x8x1xf32>
    %cst_71 = arith.constant dense<0.000000e+00> : vector<2x1xf32>
    %216 = vector.multi_reduction <add>, %215, %cst_71 [1] : vector<2x8x1xf32> to vector<2x1xf32>
    %217 = vector.shape_cast %216 : vector<2x1xf32> to vector<2x1x1xf32>
    %cst_72 = arith.constant 8.000000e+00 : f32
    %218 = vector.broadcast %cst_72 : f32 to vector<2x1x1xf32>
    %219 = arith.divf %217, %218 : vector<2x1x1xf32>
    %cst_73 = arith.constant 9.99999974E-6 : f32
    %220 = vector.broadcast %cst_73 : f32 to vector<2x1x1xf32>
    %221 = arith.addf %219, %220 : vector<2x1x1xf32>
    %222 = math.rsqrt %221 : vector<2x1x1xf32>
    %223 = vector.broadcast %222 : vector<2x1x1xf32> to vector<2x8x8xf32>
    %224 = arith.mulf %210, %223 : vector<2x8x8xf32>
    %c0_74 = arith.constant 0 : index
    %c62 = arith.constant 62 : index
    %c0_75 = arith.constant 0 : index
    %225 = vector.load %arg4[%c0_74, %c62, %c0_75] : memref<2x78x8xf32, #tpu.memory_space<vmem>>, vector<1x8x8xf32>
    %226 = vector.shape_cast %225 : vector<1x8x8xf32> to vector<8x8xf32>
    %227 = vector.shape_cast %226 : vector<8x8xf32> to vector<1x8x8xf32>
    %228 = vector.broadcast %227 : vector<1x8x8xf32> to vector<2x8x8xf32>
    %229 = arith.mulf %224, %228 : vector<2x8x8xf32>
    %c0_76 = arith.constant 0 : index
    %c70 = arith.constant 70 : index
    %c0_77 = arith.constant 0 : index
    %230 = vector.load %arg4[%c0_76, %c70, %c0_77] : memref<2x78x8xf32, #tpu.memory_space<vmem>>, vector<1x8x8xf32>
    %231 = vector.shape_cast %230 : vector<1x8x8xf32> to vector<8x8xf32>
    %232 = vector.shape_cast %231 : vector<8x8xf32> to vector<1x8x8xf32>
    %233 = vector.broadcast %232 : vector<1x8x8xf32> to vector<2x8x8xf32>
    %234 = arith.addf %229, %233 : vector<2x8x8xf32>
    %235 = vector.shape_cast %234 : vector<2x8x8xf32> to vector<16x8xf32>
    %c1 = arith.constant 1 : index
    %c0_78 = arith.constant 0 : index
    %c0_79 = arith.constant 0 : index
    %236 = vector.load %arg2[%c1, %c0_78, %c0_79] : memref<2x9x36xf32, #tpu.memory_space<vmem>>, vector<1x8x36xf32>
    %237 = vector.shape_cast %236 : vector<1x8x36xf32> to vector<8x36xf32>
    %cst_80 = arith.constant dense<0.000000e+00> : vector<16x36xf32>
    %238 = tpu.matmul %235, %237, %cst_80 {dimension_numbers = #tpu.dot_dimension_numbers<[1], [0], [0], [1], [0, 0, 1, 1], [], []>} : vector<16x8xf32>, vector<8x36xf32>, vector<16x36xf32> -> vector<16x36xf32>
    %c1_81 = arith.constant 1 : index
    %c8_82 = arith.constant 8 : index
    %c0_83 = arith.constant 0 : index
    %239 = vector.load %arg2[%c1_81, %c8_82, %c0_83] : memref<2x9x36xf32, #tpu.memory_space<vmem>>, vector<1x1x36xf32>
    %240 = vector.shape_cast %239 : vector<1x1x36xf32> to vector<1x36xf32>
    %241 = vector.broadcast %240 : vector<1x36xf32> to vector<16x36xf32>
    %242 = arith.addf %238, %241 : vector<16x36xf32>
    %243 = vector.extract_strided_slice %242 {offsets = [0, 24], sizes = [16, 12], strides = [1, 1]} : vector<16x36xf32> to vector<16x12xf32>
    %244 = vector.shape_cast %243 : vector<16x12xf32> to vector<2x8x12xf32>
    %cst_84 = arith.constant 0.000000e+00 : f32
    %245 = vector.broadcast %cst_84 : f32 to vector<2x8x12xf32>
    %246 = vector.extract_strided_slice %242 {offsets = [0, 0], sizes = [16, 4], strides = [1, 1]} : vector<16x36xf32> to vector<16x4xf32>
    %247 = vector.shape_cast %246 : vector<16x4xf32> to vector<2x8x4xf32>
    %248 = vector.extract_strided_slice %242 {offsets = [0, 12], sizes = [16, 4], strides = [1, 1]} : vector<16x36xf32> to vector<16x4xf32>
    %249 = vector.shape_cast %248 : vector<16x4xf32> to vector<2x8x4xf32>
    "tpu.trace_start"() <{level = 10 : i32, message = "bqa,bka->bqk"}> : () -> ()
    %cst_85 = arith.constant dense<0.000000e+00> : vector<2x8x8xf32>
    %250 = tpu.matmul %247, %249, %cst_85 {dimension_numbers = #tpu.dot_dimension_numbers<[2], [2], [1], [1], [0, 0, 0, 1, 1, 1], [0], [0]>} : vector<2x8x4xf32>, vector<2x8x4xf32>, vector<2x8x8xf32> -> vector<2x8x8xf32>
    "tpu.trace_stop"() : () -> ()
    %cst_86 = arith.constant 5.000000e-01 : f32
    %251 = vector.broadcast %cst_86 : f32 to vector<2x8x8xf32>
    %252 = arith.mulf %250, %251 : vector<2x8x8xf32>
    %cst_87 = arith.constant dense<0xFF800000> : vector<2x8xf32>
    %253 = vector.multi_reduction <maximumf>, %252, %cst_87 [2] : vector<2x8x8xf32> to vector<2x8xf32>
    %254 = vector.shape_cast %253 : vector<2x8xf32> to vector<2x8x1xf32>
    %255 = vector.broadcast %254 : vector<2x8x1xf32> to vector<2x8x8xf32>
    %256 = arith.subf %252, %255 : vector<2x8x8xf32>
    %257 = math.exp %256 : vector<2x8x8xf32>
    %cst_88 = arith.constant dense<0.000000e+00> : vector<2x8xf32>
    %258 = vector.multi_reduction <add>, %257, %cst_88 [2] : vector<2x8x8xf32> to vector<2x8xf32>
    %259 = vector.shape_cast %258 : vector<2x8xf32> to vector<2x8x1xf32>
    %260 = tpu.reciprocal %259 {approx = true} : vector<2x8x1xf32> -> vector<2x8x1xf32>
    %261 = vector.broadcast %260 : vector<2x8x1xf32> to vector<2x8x8xf32>
    %262 = arith.mulf %257, %261 : vector<2x8x8xf32>
    %c0_i32_89 = arith.constant 0 : i32
    %263 = vector.broadcast %c0_i32_89 : i32 to vector<2x8x12xi32>
    %264 = arith.cmpi sge, %48, %263 : vector<2x8x12xi32>
    %c4_i32_90 = arith.constant 4 : i32
    %265 = vector.broadcast %c4_i32_90 : i32 to vector<2x8x12xi32>
    %266 = arith.cmpi slt, %48, %265 : vector<2x8x12xi32>
    %267 = arith.andi %264, %266 : vector<2x8x12xi1>
    %cst_91 = arith.constant 0.000000e+00 : f32
    %268 = vector.broadcast %cst_91 : f32 to vector<2x8x12xf32>
    %269 = arith.select %267, %244, %268 : vector<2x8x12xi1>, vector<2x8x12xf32>
    "tpu.trace_start"() <{level = 10 : i32, message = "bqk,bkc->bqc"}> : () -> ()
    %cst_92 = arith.constant dense<0.000000e+00> : vector<2x8x12xf32>
    %270 = tpu.matmul %262, %269, %cst_92 {dimension_numbers = #tpu.dot_dimension_numbers<[2], [1], [1], [2], [0, 0, 0, 1, 1, 2], [0], [0]>} : vector<2x8x8xf32>, vector<2x8x12xf32>, vector<2x8x12xf32> -> vector<2x8x12xf32>
    "tpu.trace_stop"() : () -> ()
    %271 = arith.addf %245, %270 : vector<2x8x12xf32>
    %272 = vector.extract_strided_slice %242 {offsets = [0, 4], sizes = [16, 4], strides = [1, 1]} : vector<16x36xf32> to vector<16x4xf32>
    %273 = vector.shape_cast %272 : vector<16x4xf32> to vector<2x8x4xf32>
    %274 = vector.extract_strided_slice %242 {offsets = [0, 16], sizes = [16, 4], strides = [1, 1]} : vector<16x36xf32> to vector<16x4xf32>
    %275 = vector.shape_cast %274 : vector<16x4xf32> to vector<2x8x4xf32>
    "tpu.trace_start"() <{level = 10 : i32, message = "bqa,bka->bqk"}> : () -> ()
    %cst_93 = arith.constant dense<0.000000e+00> : vector<2x8x8xf32>
    %276 = tpu.matmul %273, %275, %cst_93 {dimension_numbers = #tpu.dot_dimension_numbers<[2], [2], [1], [1], [0, 0, 0, 1, 1, 1], [0], [0]>} : vector<2x8x4xf32>, vector<2x8x4xf32>, vector<2x8x8xf32> -> vector<2x8x8xf32>
    "tpu.trace_stop"() : () -> ()
    %cst_94 = arith.constant 5.000000e-01 : f32
    %277 = vector.broadcast %cst_94 : f32 to vector<2x8x8xf32>
    %278 = arith.mulf %276, %277 : vector<2x8x8xf32>
    %cst_95 = arith.constant dense<0xFF800000> : vector<2x8xf32>
    %279 = vector.multi_reduction <maximumf>, %278, %cst_95 [2] : vector<2x8x8xf32> to vector<2x8xf32>
    %280 = vector.shape_cast %279 : vector<2x8xf32> to vector<2x8x1xf32>
    %281 = vector.broadcast %280 : vector<2x8x1xf32> to vector<2x8x8xf32>
    %282 = arith.subf %278, %281 : vector<2x8x8xf32>
    %283 = math.exp %282 : vector<2x8x8xf32>
    %cst_96 = arith.constant dense<0.000000e+00> : vector<2x8xf32>
    %284 = vector.multi_reduction <add>, %283, %cst_96 [2] : vector<2x8x8xf32> to vector<2x8xf32>
    %285 = vector.shape_cast %284 : vector<2x8xf32> to vector<2x8x1xf32>
    %286 = tpu.reciprocal %285 {approx = true} : vector<2x8x1xf32> -> vector<2x8x1xf32>
    %287 = vector.broadcast %286 : vector<2x8x1xf32> to vector<2x8x8xf32>
    %288 = arith.mulf %283, %287 : vector<2x8x8xf32>
    %c4_i32_97 = arith.constant 4 : i32
    %289 = vector.broadcast %c4_i32_97 : i32 to vector<2x8x12xi32>
    %290 = arith.cmpi sge, %48, %289 : vector<2x8x12xi32>
    %c8_i32_98 = arith.constant 8 : i32
    %291 = vector.broadcast %c8_i32_98 : i32 to vector<2x8x12xi32>
    %292 = arith.cmpi slt, %48, %291 : vector<2x8x12xi32>
    %293 = arith.andi %290, %292 : vector<2x8x12xi1>
    %cst_99 = arith.constant 0.000000e+00 : f32
    %294 = vector.broadcast %cst_99 : f32 to vector<2x8x12xf32>
    %295 = arith.select %293, %244, %294 : vector<2x8x12xi1>, vector<2x8x12xf32>
    "tpu.trace_start"() <{level = 10 : i32, message = "bqk,bkc->bqc"}> : () -> ()
    %cst_100 = arith.constant dense<0.000000e+00> : vector<2x8x12xf32>
    %296 = tpu.matmul %288, %295, %cst_100 {dimension_numbers = #tpu.dot_dimension_numbers<[2], [1], [1], [2], [0, 0, 0, 1, 1, 2], [0], [0]>} : vector<2x8x8xf32>, vector<2x8x12xf32>, vector<2x8x12xf32> -> vector<2x8x12xf32>
    "tpu.trace_stop"() : () -> ()
    %297 = arith.addf %271, %296 : vector<2x8x12xf32>
    %298 = vector.extract_strided_slice %242 {offsets = [0, 8], sizes = [16, 4], strides = [1, 1]} : vector<16x36xf32> to vector<16x4xf32>
    %299 = vector.shape_cast %298 : vector<16x4xf32> to vector<2x8x4xf32>
    %300 = vector.extract_strided_slice %242 {offsets = [0, 20], sizes = [16, 4], strides = [1, 1]} : vector<16x36xf32> to vector<16x4xf32>
    %301 = vector.shape_cast %300 : vector<16x4xf32> to vector<2x8x4xf32>
    "tpu.trace_start"() <{level = 10 : i32, message = "bqa,bka->bqk"}> : () -> ()
    %cst_101 = arith.constant dense<0.000000e+00> : vector<2x8x8xf32>
    %302 = tpu.matmul %299, %301, %cst_101 {dimension_numbers = #tpu.dot_dimension_numbers<[2], [2], [1], [1], [0, 0, 0, 1, 1, 1], [0], [0]>} : vector<2x8x4xf32>, vector<2x8x4xf32>, vector<2x8x8xf32> -> vector<2x8x8xf32>
    "tpu.trace_stop"() : () -> ()
    %cst_102 = arith.constant 5.000000e-01 : f32
    %303 = vector.broadcast %cst_102 : f32 to vector<2x8x8xf32>
    %304 = arith.mulf %302, %303 : vector<2x8x8xf32>
    %cst_103 = arith.constant dense<0xFF800000> : vector<2x8xf32>
    %305 = vector.multi_reduction <maximumf>, %304, %cst_103 [2] : vector<2x8x8xf32> to vector<2x8xf32>
    %306 = vector.shape_cast %305 : vector<2x8xf32> to vector<2x8x1xf32>
    %307 = vector.broadcast %306 : vector<2x8x1xf32> to vector<2x8x8xf32>
    %308 = arith.subf %304, %307 : vector<2x8x8xf32>
    %309 = math.exp %308 : vector<2x8x8xf32>
    %cst_104 = arith.constant dense<0.000000e+00> : vector<2x8xf32>
    %310 = vector.multi_reduction <add>, %309, %cst_104 [2] : vector<2x8x8xf32> to vector<2x8xf32>
    %311 = vector.shape_cast %310 : vector<2x8xf32> to vector<2x8x1xf32>
    %312 = tpu.reciprocal %311 {approx = true} : vector<2x8x1xf32> -> vector<2x8x1xf32>
    %313 = vector.broadcast %312 : vector<2x8x1xf32> to vector<2x8x8xf32>
    %314 = arith.mulf %309, %313 : vector<2x8x8xf32>
    %c8_i32_105 = arith.constant 8 : i32
    %315 = vector.broadcast %c8_i32_105 : i32 to vector<2x8x12xi32>
    %316 = arith.cmpi sge, %48, %315 : vector<2x8x12xi32>
    %c12_i32_106 = arith.constant 12 : i32
    %317 = vector.broadcast %c12_i32_106 : i32 to vector<2x8x12xi32>
    %318 = arith.cmpi slt, %48, %317 : vector<2x8x12xi32>
    %319 = arith.andi %316, %318 : vector<2x8x12xi1>
    %cst_107 = arith.constant 0.000000e+00 : f32
    %320 = vector.broadcast %cst_107 : f32 to vector<2x8x12xf32>
    %321 = arith.select %319, %244, %320 : vector<2x8x12xi1>, vector<2x8x12xf32>
    "tpu.trace_start"() <{level = 10 : i32, message = "bqk,bkc->bqc"}> : () -> ()
    %cst_108 = arith.constant dense<0.000000e+00> : vector<2x8x12xf32>
    %322 = tpu.matmul %314, %321, %cst_108 {dimension_numbers = #tpu.dot_dimension_numbers<[2], [1], [1], [2], [0, 0, 0, 1, 1, 2], [0], [0]>} : vector<2x8x8xf32>, vector<2x8x12xf32>, vector<2x8x12xf32> -> vector<2x8x12xf32>
    "tpu.trace_stop"() : () -> ()
    %323 = arith.addf %297, %322 : vector<2x8x12xf32>
    %324 = vector.shape_cast %323 : vector<2x8x12xf32> to vector<16x12xf32>
    %c1_109 = arith.constant 1 : index
    %c0_110 = arith.constant 0 : index
    %c0_111 = arith.constant 0 : index
    %325 = vector.load %arg4[%c1_109, %c0_110, %c0_111] : memref<2x78x8xf32, #tpu.memory_space<vmem>>, vector<1x12x8xf32>
    %326 = vector.shape_cast %325 : vector<1x12x8xf32> to vector<12x8xf32>
    %cst_112 = arith.constant dense<0.000000e+00> : vector<16x8xf32>
    %327 = tpu.matmul %324, %326, %cst_112 {dimension_numbers = #tpu.dot_dimension_numbers<[1], [0], [0], [1], [0, 0, 1, 1], [], []>} : vector<16x12xf32>, vector<12x8xf32>, vector<16x8xf32> -> vector<16x8xf32>
    %c1_113 = arith.constant 1 : index
    %c12_114 = arith.constant 12 : index
    %c0_115 = arith.constant 0 : index
    %328 = vector.load %arg4[%c1_113, %c12_114, %c0_115] : memref<2x78x8xf32, #tpu.memory_space<vmem>>, vector<1x1x8xf32>
    %329 = vector.shape_cast %328 : vector<1x1x8xf32> to vector<1x8xf32>
    %330 = vector.broadcast %329 : vector<1x8xf32> to vector<16x8xf32>
    %331 = arith.addf %327, %330 : vector<16x8xf32>
    %332 = vector.shape_cast %331 : vector<16x8xf32> to vector<2x8x8xf32>
    %333 = arith.addf %234, %332 : vector<2x8x8xf32>
    %cst_116 = arith.constant dense<0.000000e+00> : vector<2x8xf32>
    %334 = vector.multi_reduction <add>, %333, %cst_116 [2] : vector<2x8x8xf32> to vector<2x8xf32>
    %335 = vector.shape_cast %334 : vector<2x8xf32> to vector<2x8x1xf32>
    %cst_117 = arith.constant 8.000000e+00 : f32
    %336 = vector.broadcast %cst_117 : f32 to vector<2x8x1xf32>
    %337 = arith.divf %335, %336 : vector<2x8x1xf32>
    %cst_118 = arith.constant dense<0.000000e+00> : vector<2x1xf32>
    %338 = vector.multi_reduction <add>, %337, %cst_118 [1] : vector<2x8x1xf32> to vector<2x1xf32>
    %339 = vector.shape_cast %338 : vector<2x1xf32> to vector<2x1x1xf32>
    %cst_119 = arith.constant 8.000000e+00 : f32
    %340 = vector.broadcast %cst_119 : f32 to vector<2x1x1xf32>
    %341 = arith.divf %339, %340 : vector<2x1x1xf32>
    %342 = vector.broadcast %341 : vector<2x1x1xf32> to vector<2x8x8xf32>
    %343 = arith.subf %333, %342 : vector<2x8x8xf32>
    %344 = arith.mulf %343, %343 : vector<2x8x8xf32>
    %cst_120 = arith.constant dense<0.000000e+00> : vector<2x8xf32>
    %345 = vector.multi_reduction <add>, %344, %cst_120 [2] : vector<2x8x8xf32> to vector<2x8xf32>
    %346 = vector.shape_cast %345 : vector<2x8xf32> to vector<2x8x1xf32>
    %cst_121 = arith.constant 8.000000e+00 : f32
    %347 = vector.broadcast %cst_121 : f32 to vector<2x8x1xf32>
    %348 = arith.divf %346, %347 : vector<2x8x1xf32>
    %cst_122 = arith.constant dense<0.000000e+00> : vector<2x1xf32>
    %349 = vector.multi_reduction <add>, %348, %cst_122 [1] : vector<2x8x1xf32> to vector<2x1xf32>
    %350 = vector.shape_cast %349 : vector<2x1xf32> to vector<2x1x1xf32>
    %cst_123 = arith.constant 8.000000e+00 : f32
    %351 = vector.broadcast %cst_123 : f32 to vector<2x1x1xf32>
    %352 = arith.divf %350, %351 : vector<2x1x1xf32>
    %cst_124 = arith.constant 9.99999974E-6 : f32
    %353 = vector.broadcast %cst_124 : f32 to vector<2x1x1xf32>
    %354 = arith.addf %352, %353 : vector<2x1x1xf32>
    %355 = math.rsqrt %354 : vector<2x1x1xf32>
    %356 = vector.broadcast %355 : vector<2x1x1xf32> to vector<2x8x8xf32>
    %357 = arith.mulf %343, %356 : vector<2x8x8xf32>
    %c1_125 = arith.constant 1 : index
    %c46_126 = arith.constant 46 : index
    %c0_127 = arith.constant 0 : index
    %358 = vector.load %arg4[%c1_125, %c46_126, %c0_127] : memref<2x78x8xf32, #tpu.memory_space<vmem>>, vector<1x8x8xf32>
    %359 = vector.shape_cast %358 : vector<1x8x8xf32> to vector<8x8xf32>
    %360 = vector.shape_cast %359 : vector<8x8xf32> to vector<1x8x8xf32>
    %361 = vector.broadcast %360 : vector<1x8x8xf32> to vector<2x8x8xf32>
    %362 = arith.mulf %357, %361 : vector<2x8x8xf32>
    %c1_128 = arith.constant 1 : index
    %c54_129 = arith.constant 54 : index
    %c0_130 = arith.constant 0 : index
    %363 = vector.load %arg4[%c1_128, %c54_129, %c0_130] : memref<2x78x8xf32, #tpu.memory_space<vmem>>, vector<1x8x8xf32>
    %364 = vector.shape_cast %363 : vector<1x8x8xf32> to vector<8x8xf32>
    %365 = vector.shape_cast %364 : vector<8x8xf32> to vector<1x8x8xf32>
    %366 = vector.broadcast %365 : vector<1x8x8xf32> to vector<2x8x8xf32>
    %367 = arith.addf %362, %366 : vector<2x8x8xf32>
    %368 = vector.shape_cast %367 : vector<2x8x8xf32> to vector<16x8xf32>
    %c1_131 = arith.constant 1 : index
    %c0_132 = arith.constant 0 : index
    %c0_133 = arith.constant 0 : index
    %369 = vector.load %arg3[%c1_131, %c0_132, %c0_133] : memref<2x9x32xf32, #tpu.memory_space<vmem>>, vector<1x8x32xf32>
    %370 = vector.shape_cast %369 : vector<1x8x32xf32> to vector<8x32xf32>
    %cst_134 = arith.constant dense<0.000000e+00> : vector<16x32xf32>
    %371 = tpu.matmul %368, %370, %cst_134 {dimension_numbers = #tpu.dot_dimension_numbers<[1], [0], [0], [1], [0, 0, 1, 1], [], []>} : vector<16x8xf32>, vector<8x32xf32>, vector<16x32xf32> -> vector<16x32xf32>
    %c1_135 = arith.constant 1 : index
    %c8_136 = arith.constant 8 : index
    %c0_137 = arith.constant 0 : index
    %372 = vector.load %arg3[%c1_135, %c8_136, %c0_137] : memref<2x9x32xf32, #tpu.memory_space<vmem>>, vector<1x1x32xf32>
    %373 = vector.shape_cast %372 : vector<1x1x32xf32> to vector<1x32xf32>
    %374 = vector.broadcast %373 : vector<1x32xf32> to vector<16x32xf32>
    %375 = arith.addf %371, %374 : vector<16x32xf32>
    %cst_138 = arith.constant 0.000000e+00 : f32
    %376 = vector.broadcast %cst_138 : f32 to vector<16x32xf32>
    %377 = arith.maximumf %375, %376 : vector<16x32xf32>
    %c1_139 = arith.constant 1 : index
    %c14_140 = arith.constant 14 : index
    %c0_141 = arith.constant 0 : index
    %378 = vector.load %arg4[%c1_139, %c14_140, %c0_141] : memref<2x78x8xf32, #tpu.memory_space<vmem>>, vector<1x32x8xf32>
    %379 = vector.shape_cast %378 : vector<1x32x8xf32> to vector<32x8xf32>
    %cst_142 = arith.constant dense<0.000000e+00> : vector<16x8xf32>
    %380 = tpu.matmul %377, %379, %cst_142 {dimension_numbers = #tpu.dot_dimension_numbers<[1], [0], [0], [1], [0, 0, 1, 1], [], []>} : vector<16x32xf32>, vector<32x8xf32>, vector<16x8xf32> -> vector<16x8xf32>
    %c1_143 = arith.constant 1 : index
    %c13_144 = arith.constant 13 : index
    %c0_145 = arith.constant 0 : index
    %381 = vector.load %arg4[%c1_143, %c13_144, %c0_145] : memref<2x78x8xf32, #tpu.memory_space<vmem>>, vector<1x1x8xf32>
    %382 = vector.shape_cast %381 : vector<1x1x8xf32> to vector<1x8xf32>
    %383 = vector.broadcast %382 : vector<1x8xf32> to vector<16x8xf32>
    %384 = arith.addf %380, %383 : vector<16x8xf32>
    %385 = vector.shape_cast %384 : vector<16x8xf32> to vector<2x8x8xf32>
    %386 = arith.addf %385, %367 : vector<2x8x8xf32>
    %cst_146 = arith.constant dense<0.000000e+00> : vector<2x8xf32>
    %387 = vector.multi_reduction <add>, %386, %cst_146 [2] : vector<2x8x8xf32> to vector<2x8xf32>
    %388 = vector.shape_cast %387 : vector<2x8xf32> to vector<2x8x1xf32>
    %cst_147 = arith.constant 8.000000e+00 : f32
    %389 = vector.broadcast %cst_147 : f32 to vector<2x8x1xf32>
    %390 = arith.divf %388, %389 : vector<2x8x1xf32>
    %cst_148 = arith.constant dense<0.000000e+00> : vector<2x1xf32>
    %391 = vector.multi_reduction <add>, %390, %cst_148 [1] : vector<2x8x1xf32> to vector<2x1xf32>
    %392 = vector.shape_cast %391 : vector<2x1xf32> to vector<2x1x1xf32>
    %cst_149 = arith.constant 8.000000e+00 : f32
    %393 = vector.broadcast %cst_149 : f32 to vector<2x1x1xf32>
    %394 = arith.divf %392, %393 : vector<2x1x1xf32>
    %395 = vector.broadcast %394 : vector<2x1x1xf32> to vector<2x8x8xf32>
    %396 = arith.subf %386, %395 : vector<2x8x8xf32>
    %397 = arith.mulf %396, %396 : vector<2x8x8xf32>
    %cst_150 = arith.constant dense<0.000000e+00> : vector<2x8xf32>
    %398 = vector.multi_reduction <add>, %397, %cst_150 [2] : vector<2x8x8xf32> to vector<2x8xf32>
    %399 = vector.shape_cast %398 : vector<2x8xf32> to vector<2x8x1xf32>
    %cst_151 = arith.constant 8.000000e+00 : f32
    %400 = vector.broadcast %cst_151 : f32 to vector<2x8x1xf32>
    %401 = arith.divf %399, %400 : vector<2x8x1xf32>
    %cst_152 = arith.constant dense<0.000000e+00> : vector<2x1xf32>
    %402 = vector.multi_reduction <add>, %401, %cst_152 [1] : vector<2x8x1xf32> to vector<2x1xf32>
    %403 = vector.shape_cast %402 : vector<2x1xf32> to vector<2x1x1xf32>
    %cst_153 = arith.constant 8.000000e+00 : f32
    %404 = vector.broadcast %cst_153 : f32 to vector<2x1x1xf32>
    %405 = arith.divf %403, %404 : vector<2x1x1xf32>
    %cst_154 = arith.constant 9.99999974E-6 : f32
    %406 = vector.broadcast %cst_154 : f32 to vector<2x1x1xf32>
    %407 = arith.addf %405, %406 : vector<2x1x1xf32>
    %408 = math.rsqrt %407 : vector<2x1x1xf32>
    %409 = vector.broadcast %408 : vector<2x1x1xf32> to vector<2x8x8xf32>
    %410 = arith.mulf %396, %409 : vector<2x8x8xf32>
    %c1_155 = arith.constant 1 : index
    %c62_156 = arith.constant 62 : index
    %c0_157 = arith.constant 0 : index
    %411 = vector.load %arg4[%c1_155, %c62_156, %c0_157] : memref<2x78x8xf32, #tpu.memory_space<vmem>>, vector<1x8x8xf32>
    %412 = vector.shape_cast %411 : vector<1x8x8xf32> to vector<8x8xf32>
    %413 = vector.shape_cast %412 : vector<8x8xf32> to vector<1x8x8xf32>
    %414 = vector.broadcast %413 : vector<1x8x8xf32> to vector<2x8x8xf32>
    %415 = arith.mulf %410, %414 : vector<2x8x8xf32>
    %c1_158 = arith.constant 1 : index
    %c70_159 = arith.constant 70 : index
    %c0_160 = arith.constant 0 : index
    %416 = vector.load %arg4[%c1_158, %c70_159, %c0_160] : memref<2x78x8xf32, #tpu.memory_space<vmem>>, vector<1x8x8xf32>
    %417 = vector.shape_cast %416 : vector<1x8x8xf32> to vector<8x8xf32>
    %418 = vector.shape_cast %417 : vector<8x8xf32> to vector<1x8x8xf32>
    %419 = vector.broadcast %418 : vector<1x8x8xf32> to vector<2x8x8xf32>
    %420 = arith.addf %415, %419 : vector<2x8x8xf32>
    %421 = vector.extract_strided_slice %420 {offsets = [0, 0, 0], sizes = [2, 8, 7], strides = [1, 1, 1]} : vector<2x8x8xf32> to vector<2x8x7xf32>
    %cst_161 = arith.constant dense<0.000000e+00> : vector<2x8xf32>
    %422 = vector.multi_reduction <add>, %421, %cst_161 [2] : vector<2x8x7xf32> to vector<2x8xf32>
    %cst_162 = arith.constant 7.000000e+00 : f32
    %423 = vector.broadcast %cst_162 : f32 to vector<2x8xf32>
    %424 = arith.divf %422, %423 : vector<2x8xf32>
    %c0_163 = arith.constant 0 : index
    %c0_164 = arith.constant 0 : index
    %425 = vector.load %arg5[%c0_163, %c0_164] : memref<81x50xf32, #tpu.memory_space<vmem>>, vector<8x50xf32>
    %cst_165 = arith.constant dense<0.000000e+00> : vector<2x50xf32>
    %426 = tpu.matmul %424, %425, %cst_165 {dimension_numbers = #tpu.dot_dimension_numbers<[1], [0], [0], [1], [0, 0, 1, 1], [], []>} : vector<2x8xf32>, vector<8x50xf32>, vector<2x50xf32> -> vector<2x50xf32>
    %c8_166 = arith.constant 8 : index
    %c0_167 = arith.constant 0 : index
    %427 = vector.load %arg5[%c8_166, %c0_167] : memref<81x50xf32, #tpu.memory_space<vmem>>, vector<1x50xf32>
    %428 = vector.broadcast %427 : vector<1x50xf32> to vector<2x50xf32>
    %429 = arith.addf %426, %428 : vector<2x50xf32>
    %cst_168 = arith.constant 0.000000e+00 : f32
    %430 = vector.broadcast %cst_168 : f32 to vector<2x50xf32>
    %431 = arith.maximumf %429, %430 : vector<2x50xf32>
    %c9 = arith.constant 9 : index
    %c0_169 = arith.constant 0 : index
    %432 = vector.load %arg5[%c9, %c0_169] : memref<81x50xf32, #tpu.memory_space<vmem>>, vector<50x20xf32>
    %cst_170 = arith.constant dense<0.000000e+00> : vector<2x20xf32>
    %433 = tpu.matmul %431, %432, %cst_170 {dimension_numbers = #tpu.dot_dimension_numbers<[1], [0], [0], [1], [0, 0, 1, 1], [], []>} : vector<2x50xf32>, vector<50x20xf32>, vector<2x20xf32> -> vector<2x20xf32>
    %c59 = arith.constant 59 : index
    %c0_171 = arith.constant 0 : index
    %434 = vector.load %arg5[%c59, %c0_171] : memref<81x50xf32, #tpu.memory_space<vmem>>, vector<1x20xf32>
    %435 = vector.broadcast %434 : vector<1x20xf32> to vector<2x20xf32>
    %436 = arith.addf %433, %435 : vector<2x20xf32>
    %cst_172 = arith.constant 0.000000e+00 : f32
    %437 = vector.broadcast %cst_172 : f32 to vector<2x20xf32>
    %438 = arith.maximumf %436, %437 : vector<2x20xf32>
    %c60 = arith.constant 60 : index
    %c0_173 = arith.constant 0 : index
    %439 = vector.load %arg5[%c60, %c0_173] : memref<81x50xf32, #tpu.memory_space<vmem>>, vector<20x1xf32>
    %cst_174 = arith.constant dense<0.000000e+00> : vector<2x1xf32>
    %440 = tpu.matmul %438, %439, %cst_174 {dimension_numbers = #tpu.dot_dimension_numbers<[1], [0], [0], [1], [0, 0, 1, 1], [], []>} : vector<2x20xf32>, vector<20x1xf32>, vector<2x1xf32> -> vector<2x1xf32>
    %c80 = arith.constant 80 : index
    %c0_175 = arith.constant 0 : index
    %441 = vector.load %arg5[%c80, %c0_175] : memref<81x50xf32, #tpu.memory_space<vmem>>, vector<1x1xf32>
    %442 = vector.broadcast %441 : vector<1x1xf32> to vector<2x1xf32>
    %443 = arith.addf %440, %442 : vector<2x1xf32>
    %444 = vector.shape_cast %443 : vector<2x1xf32> to vector<2x1xf32>
    %445 = vector.broadcast %444 : vector<2x1xf32> to vector<2x8xf32>
    %c0_176 = arith.constant 0 : index
    %c0_177 = arith.constant 0 : index
    %446 = vector.load %arg6[%c0_176, %c0_177] : memref<2x8xf32, #tpu.memory_space<vmem>>, vector<2x8xf32>
    tpu.vector_store %arg6[%c0_176, %c0_177], %445 {strides = array<i32>} : memref<2x8xf32, #tpu.memory_space<vmem>>, vector<2x8xf32>,
    return
  }
}

</mosaic_0001>

<bundles_post_ra>
// kernel: network_forward.1
= control target key start
LH: loop header
LB: loop body
LE: loop exit
PB: predicated region body
PF: predicated region fallthrough
CT: control target
= control target key end

     0   :  { %vm26_vm0 = vcmask 31744   ;;  %v36_v0 = vlaneseq  ;;  %v4238_v15 = vmov 0.0   ;;  %vm302_vm2 = vcmask 1044480   ;;  %s4247_s29 = smov 116   ;;  %s4248_s30 = smov 112   ;;  %s4832_s0 = inlined_call_operand.vmem [shape: f32[2,8,5], index: 0, kind: input, shape index: {}]   ;;  %s4833_s1 = inlined_call_operand.vmem [shape: f32[8,8], index: 1, kind: input, shape index: {}]   ;;  %s4834_s2 = inlined_call_operand.vmem [shape: f32[2,9,36], index: 2, kind: input, shape index: {}]   ;;  %s4835_s4 = inlined_call_operand.vmem [shape: f32[2,78,8], index: 4, kind: input, shape index: {}]   ;;  %s4836_s3 = inlined_call_operand.vmem [shape: f32[2,9,32], index: 3, kind: input, shape index: {}]   ;;  %s4837_s5 = inlined_call_operand.vmem [shape: f32[81,50], index: 5, kind: input, shape index: {}]   ;;  %s4838_s6 = inlined_call_operand.vmem [shape: f32[2,8], index: 6, kind: output, shape index: {}]  }
   0x1   :  { %v23_v1 = vld [vmem:[%s4832_s0] sm:$0xff]  ;;  %v24_v2 = vld [vmem:[%s4832_s0 + $0x8] sm:$0xff]  ;;  %vm295_vm3 = vcmask 39936   ;;  %v4239_v18 = vmov 0   ;;  %v4240_v52 = vmov 2102212464  }
   0x2   :  { %v27_v3 = vsel %vm26_vm0, %v23_v1, 0.0  ;;  %v4297_v4 = vshrl.u32 %v36_v0, 7  ;;  %v4302_v5 = vld [vmem:[%s4833_s1] sm:$0xff]  ;;  %v30_v6 = vsel %vm26_vm0, %v24_v2, 0.0  ;;  %v4311_v13 = vand.u32 127, %v36_v0  ;;  %3873 = vmatprep.mubr.msk.f32.mxu0 %vm295_vm3, %v23_v1  ;;  %4164 = vset.pattern.permute.xlu1 %v4239_v18  ;;  %s4249_s7 = smov 124  }
   0x3   :  { %28 = vadd.xlane.f32.xlu0 %v27_v3  ;;  %v4241_v56 = vmov 920167782   ;;  %v4242_v58 = vmov 683565275   ;;  %v4243_v61 = vmov 1326507024  }
   0x4   :  { %v60_v7 = vsub.s32 2, %v4297_v4  ;;  %v71_v8 = vsub.s32 3, %v4297_v4  ;;  %v49_v11 = vsub.s32 1, %v4297_v4  ;;  %v38_v14 = vsub.s32 0, %v4297_v4  ;;  %4165 = vset.pattern.permute.xlu0 %v4239_v18  ;;  %s4250_s8 = smov 104   ;;  %s4251_s9 = smov 108  }
   0x5   :  { %vm292_vm1 = vcmp.eq.s32.totalorder %v4297_v4, %v4311_v13  ;;  %v4244_v0 = vmov 2475754826   ;;  %s4252_s10 = smov 120  }
   0x6   :  { %v61_v9 = vrot.slane %v4302_v5, %v60_v7  ;;  %v72_v10 = vrot.slane %v4302_v5, %v71_v8  ;;  %v50_v12 = vrot.slane %v4302_v5, %v49_v11  ;;  %v3672_v16 = vsel %vm292_vm1, 1.0, %v4238_v15 }
   0x7   :  { %31 = vadd.xlane.f32.xlu0 %v30_v6  ;;  %3871 = vmatprep.subr.msk.mxu0 %vm302_vm2, %v3672_v16  ;;  %v39_v17 = vrot.slane %v4302_v5, %v38_v14  ;;  %v4245_v6 = vmov 2131351028  }
   0x8   :  { %64 = vbcast.lane.b32.xlu1 %v61_v9, 256  ;;  %3872 = vmatpush3.msk.msra.mxu0 %vm302_vm2, %v3672_v16 }
   0x9   :  { %3874 = vmatmul.mubr.msk.f32.vlgmr.msra.gmra.mrb[0].mxu0 %vm295_vm3, %v24_v2  ;;  %3891 = vmatprep.subr.mxu0 %v4238_v15 }
   0xc   :  { %75 = vbcast.lane.b32.xlu1 %v72_v10, 256 }
  0x10   :  { %53 = vbcast.lane.b32.xlu1 %v50_v12, 256 }
  0x1d   :  { %42 = vbcast.lane.b32.xlu0 %v39_v17, 256 }
  0x7a   :  { %v65_v19 = vpop.permute.xlu1 %64 }
  0x7e   :  { %v76_v22 = vpop.permute.xlu1 %75 }
  0x82   :  { %v54_v31 = vpop.permute.xlu1 %53 }
  0x90   :  { %v29_v20 = vpop.xlane.xlu0 %28 }
  0x91   :  { %v34_v21 = vmul.f32 0.25, %v29_v20 }
  0x93   :  { %v67_v23 = vmul.f32 %v65_v19, %v34_v21 }
  0x94   :  { %v32_v24 = vpop.xlane.xlu0 %31 }
  0x95   :  { %v4319_v25 = vadd.f32 %v76_v22, %v67_v23  ;;  %v35_v26 = vmul.f32 0.25, %v32_v24 }
  0x97   :  { %v83_v27 = vand.u32 2139095040, %v4319_v25  ;;  %v68_v28 = vmul.f32 %v65_v19, %v35_v26  ;;  %v80_v29 = vand.u32 2147483647, %v4319_v25  ;;  %vm82_vm3 = vcmp.lt.s32.totalorder %v4319_v25, 0 }
  0x98   :  { %v43_v30 = vpop.permute.xlu0 %42 }
  0x99   :  { %v84_v32 = vshrl.u32 %v83_v27, 23  ;;  %v4323_v33 = vadd.f32 %v76_v22, %v68_v28  ;;  %v45_v34 = vmul.f32 %v43_v30, %v34_v21  ;;  %v46_v35 = vmul.f32 %v43_v30, %v35_v26 }
  0x9a   :  { %v87_v39 = vand.u32 8388607, %v80_v29 }
  0x9b   :  { %v3664_v36 = vadd.s32 4294967169, %v84_v32  ;;  %v187_v37 = vand.u32 2139095040, %v4323_v33  ;;  %v56_v38 = vadd.f32 %v54_v31, %v45_v34  ;;  %v184_v40 = vand.u32 2147483647, %v4323_v33 }
  0x9c   :  { %v57_v43 = vadd.f32 %v54_v31, %v46_v35  ;;  %v88_v45 = vor.u32 8388608, %v87_v39 }
  0x9d   :  { %v90_v41 = vadd.s32 1, %v3664_v36  ;;  %v188_v42 = vshrl.u32 %v187_v37, 23  ;;  %394 = vperm.xlu1 %4164, %v56_v38   ;;  %v191_v46 = vand.u32 8388607, %v184_v40 }
  0x9e   :  { %v4331_v54 = vshll.u32 %v88_v45, 8 }
  0x9f   :  { %vm91_vm4 = vcmp.gt.s32.totalorder %v90_v41, 0  ;;  %v3668_v44 = vadd.s32 4294967169, %v188_v42  ;;  %v192_v55 = vor.u32 8388608, %v191_v46 }
  0xa0   :  { %v92_v47 = vsel %vm91_vm4, %v90_v41, 0  ;;  %vm81_vm4 = vcmp.le.f32.partialorder %v80_v29, 0.7853982 }
  0xa1   :  { %v93_v48 = vshrl.u32 %v92_v47, 5  ;;  %v94_v49 = vand.u32 31, %v92_v47  ;;  %v194_v50 = vadd.s32 1, %v3668_v44  ;;  %399 = vperm.xlu1 %4164, %v57_v43   ;;  %v4335_v23 = vshll.u32 %v192_v55, 8 }
  0xa3   :  { %v95_v51 = vsub.s32 32, %v94_v49  ;;  %v106_v53 = vshll.u32 %v4240_v52, %v94_v49  ;;  %v109_v57 = vshll.u32 %v4241_v56, %v94_v49  ;;  %vm115_vm5 = vcmp.lt.s32.totalorder %v93_v48, 4 }
  0xa4   :  { %vm195_vm6 = vcmp.gt.s32.totalorder %v194_v50, 0  ;;  %v97_v59 = vshll.u32 %v4242_v58, %v94_v49  ;;  %v100_v1 = vshll.u32 %v4244_v0, %v94_v49  ;;  %v103_v8 = vshll.u32 %v4245_v6, %v94_v49 }
  0xa5   :  { %v107_v60 = vshrl.u32 %v4241_v56, %v95_v51  ;;  %v110_v62 = vshrl.u32 %v4243_v61, %v95_v51  ;;  %v196_v63 = vsel %vm195_vm6, %v194_v50, 0  ;;  %v98_v3 = vshrl.u32 %v4244_v0, %v95_v51 }
  0xa6   :  { %v198_v2 = vand.u32 31, %v196_v63  ;;  %v101_v7 = vshrl.u32 %v4245_v6, %v95_v51  ;;  %v96_v11 = vshrl.u32 %v4242_v58, %v95_v51  ;;  %v104_v12 = vshrl.u32 %v4240_v52, %v95_v51 }
  0xa7   :  { %v108_v9 = vor.u32 %v107_v60, %v106_v53  ;;  %v111_v10 = vor.u32 %v110_v62, %v109_v57  ;;  %v99_v16 = vor.u32 %v98_v3, %v97_v59  ;;  %vm112_vm7 = vcmp.lt.s32.totalorder %v93_v48, 1 }
  0xa8   :  { %v199_v14 = vsub.s32 32, %v198_v2  ;;  %v102_v17 = vor.u32 %v101_v7, %v100_v1  ;;  %v105_v20 = vor.u32 %v104_v12, %v103_v8  ;;  %vm114_vm8 = vcmp.lt.s32.totalorder %v93_v48, 3 }
  0xa9   :  { %v121_v18 = vsel %vm115_vm5, %v108_v9, 920167782  ;;  %v125_v19 = vsel %vm115_vm5, %v111_v10, 1326507024  ;;  %vm113_vm9 = vcmp.lt.s32.totalorder %v93_v48, 2  ;;  %v116_v24 = vsel %vm112_vm7, %v96_v11, %v99_v16 }
  0xaa   :  { %v120_v21 = vsel %vm112_vm7, %v99_v16, %v102_v17  ;;  %v126_v22 = vsel %vm114_vm8, %v108_v9, %v125_v19  ;;  %v117_v26 = vsel %vm115_vm5, %v105_v20, 2102212464  ;;  %v122_v27 = vsel %vm114_vm8, %v105_v20, %v121_v18 }
  0xab   :  { %v124_v28 = vsel %vm112_vm7, %v102_v17, %v105_v20  ;;  %v118_v30 = vsel %vm114_vm8, %v102_v17, %v117_v26  ;;  %v123_v31 = vsel %vm113_vm9, %v120_v21, %v122_v27  ;;  %v202_v34 = vshrl.u32 %v4244_v0, %v199_v14 }
  0xac   :  { %v127_v32 = vsel %vm113_vm9, %v124_v28, %v126_v22  ;;  %v197_v35 = vshrl.u32 %v196_v63, 5  ;;  %v201_v38 = vshll.u32 %v4242_v58, %v198_v2  ;;  %v119_v39 = vsel %vm113_vm9, %v116_v24, %v118_v30 }
  0xad   :  { %v4339_v36 = vmul.u32.u64.low %v4331_v54, %v127_v32  ;;  %v4340_v37 = vmul.u32.u64.high %v4331_v54, %v127_v32, %v4339_v36  ;;  %v4343_v41 = vmul.u32.u64.low %v4331_v54, %v123_v31  ;;  %v4344_v42 = vmul.u32.u64.high %v4331_v54, %v123_v31, %v4343_v41 }
  0xae   :  { %v204_v43 = vshll.u32 %v4244_v0, %v198_v2  ;;  %v203_v44 = vor.u32 %v202_v34, %v201_v38  ;;  %v205_v45 = vshrl.u32 %v4245_v6, %v199_v14  ;;  %v207_v46 = vshll.u32 %v4245_v6, %v198_v2 }
  0xaf   :  { %v208_v47 = vshrl.u32 %v4240_v52, %v199_v14  ;;  %v210_v48 = vshll.u32 %v4240_v52, %v198_v2  ;;  %v211_v49 = vshrl.u32 %v4241_v56, %v199_v14  ;;  %v213_v50 = vshll.u32 %v4241_v56, %v198_v2 }
  0xb0   :  { %v214_v51 = vshrl.u32 %v4243_v61, %v199_v14  ;;  %vm137_vm10 = vc.u32 %v4340_v37, %v4343_v41  ;;  %v200_v53 = vshrl.u32 %v4242_v58, %v199_v14  ;;  %v206_v55 = vor.u32 %v205_v45, %v204_v43 }
  0xb1   :  { %v209_v57 = vor.u32 %v208_v47, %v207_v46  ;;  %v138_v59 = vadd.s32 1, %v4344_v42  ;;  %v212_v60 = vor.u32 %v211_v49, %v210_v48  ;;  %vm216_vm11 = vcmp.lt.s32.totalorder %v197_v35, 1 }
  0xb2   :  { %v215_v62 = vor.u32 %v214_v51, %v213_v50  ;;  %v135_v63 = vmul.u32 %v4331_v54, %v119_v39  ;;  %vm218_vm12 = vcmp.lt.s32.totalorder %v197_v35, 3  ;;  %vm219_vm13 = vcmp.lt.s32.totalorder %v197_v35, 4 }
  0xb3   :  { %v224_v0 = vsel %vm216_vm11, %v203_v44, %v206_v55  ;;  %v139_v52 = vsel %vm137_vm10, %v138_v59, %v4344_v42  ;;  %v221_v1 = vsel %vm219_vm13, %v209_v57, 2102212464  ;;  %v225_v56 = vsel %vm219_vm13, %v212_v60, 920167782 }
  0xb4   :  { %v228_v61 = vsel %vm216_vm11, %v206_v55, %v209_v57  ;;  %v140_v2 = vadd.s32 %v139_v52, %v135_v63  ;;  %vm217_vm14 = vcmp.lt.s32.totalorder %v197_v35, 2  ;;  %v226_v58 = vsel %vm218_vm12, %v209_v57, %v225_v56 }
  0xb5   :  { %v229_v3 = vsel %vm219_vm13, %v215_v62, 1326507024  ;;  %v220_v6 = vsel %vm216_vm11, %v200_v53, %v203_v44  ;;  %v222_v7 = vsel %vm218_vm12, %v206_v55, %v221_v1  ;;  %v227_v8 = vsel %vm217_vm14, %v224_v0, %v226_v58 }
  0xb6   :  { %v230_v9 = vsel %vm218_vm12, %v212_v60, %v229_v3  ;;  %v141_v10 = vadd.s32 536870912, %v140_v2  ;;  %v4351_v54 = vmul.u32.u64.low %v4335_v23, %v227_v8  ;;  %v4352_v12 = vmul.u32.u64.high %v4335_v23, %v227_v8, %v4351_v54 }
  0xb7   :  { %v231_v11 = vsel %vm217_vm14, %v228_v61, %v230_v9  ;;  %v223_v18 = vsel %vm217_vm14, %v220_v6, %v222_v7  ;;  %v136_v42 = vadd.s32 %v4343_v41, %v4340_v37  ;;  %vm186_vm5 = vcmp.lt.s32.totalorder %v4323_v33, 0 }
  0xb8   :  { %v4355_v14 = vmul.u32.u64.low %v4335_v23, %v231_v11  ;;  %v4356_v16 = vmul.u32.u64.high %v4335_v23, %v231_v11, %v4355_v14  ;;  %v142_v17 = vshrl.u32 %v141_v10, 30  ;;  %v242_v20 = vadd.s32 1, %v4352_v12 }
  0xb9   :  { %v239_v21 = vmul.u32 %v4335_v23, %v223_v18  ;;  %vm185_vm6 = vcmp.le.f32.partialorder %v184_v40, 0.7853982  ;;  %vm172_vm10 = vweird.f32 %v4319_v25  ;;  %vm276_vm14 = vweird.f32 %v4323_v33 }
  0xba   :  { %v143_v19 = vshll.u32 %v142_v17, 30  ;;  %vm241_vm15 = vc.u32 %v4356_v16, %v4351_v54  ;;  %v240_v60 = vadd.s32 %v4351_v54, %v4356_v16  ;;  %v166_v41 = vsub.s32 4, %v142_v17 }
  0xbb   :  { %v243_v24 = vsel %vm241_vm15, %v242_v20, %v4352_v12  ;;  %vm381_vm15 = vcmp.eq.s32.totalorder %v4311_v13, 5 }
  0xbc   :  { %v144_v22 = vsub.s32 %v140_v2, %v143_v19  ;;  %v244_v26 = vadd.s32 %v243_v24, %v239_v21  ;;  %v167_v3 = vsel %vm82_vm3, %v166_v41, %v142_v17 }
  0xbd   :  { %v169_v8 = vsel %vm81_vm4, 0, %v167_v3 }
  0xbe   :  { %v146_v27 = vsub.s32 0, %v144_v22  ;;  %v245_v28 = vadd.s32 536870912, %v244_v26  ;;  %v173_v12 = vadd.s32 3, %v169_v8 }
  0xc0   :  { %v3665_v30 = vmin.u32 %v146_v27, %v144_v22  ;;  %v246_v31 = vshrl.u32 %v245_v28, 30  ;;  %v174_v17 = vand.u32 3, %v173_v12 }
  0xc2   :  { %v148_v32 = vclz %v3665_v30  ;;  %v247_v34 = vshll.u32 %v246_v31, 30  ;;  %v270_v54 = vsub.s32 4, %v246_v31  ;;  %vm179_vm7 = vcmp.eq.s32.totalorder %v174_v17, 2 }
  0xc3   :  { %vm176_vm8 = vcmp.eq.s32.totalorder %v174_v17, 0  ;;  %vm175_vm9 = vcmp.lt.s32.totalorder %v174_v17, 2 }
  0xc4   :  { %v3666_v35 = vadd.s32 4294967294, %v148_v32  ;;  %v248_v36 = vsub.s32 %v244_v26, %v247_v34  ;;  %v271_v16 = vsel %vm186_vm5, %v270_v54, %v246_v31 }
  0xc5   :  { %v273_v20 = vsel %vm185_vm6, 0, %v271_v16 }
  0xc6   :  { %vm3667_vm1 = vcmp.lt.s32.totalorder %v3666_v35, 0  ;;  %v250_v39 = vsub.s32 0, %v248_v36  ;;  %v277_v27 = vadd.s32 3, %v273_v20 }
  0xc7   :  { %v151_v38 = vsel %vm3667_vm1, 0, %v3666_v35  ;;  %vm391_vm1 = vcmp.eq.s32.totalorder %v4311_v13, 6 }
  0xc8   :  { %v152_v23 = vsub.s32 32, %v151_v38  ;;  %v156_v43 = vsub.s32 4294967266, %v151_v38  ;;  %v3669_v44 = vmin.u32 %v250_v39, %v248_v36  ;;  %v153_v45 = vshll.u32 %v144_v22, %v151_v38 }
  0xc9   :  { %v278_v31 = vand.u32 3, %v277_v27  ;;  %v384_v39 = vsub.s32 4, %v4297_v4 }
  0xca   :  { %v154_v46 = vshrl.u32 %v136_v42, %v152_v23  ;;  %v157_v47 = vadd.s32 127, %v156_v43  ;;  %v252_v48 = vclz %v3669_v44 }
  0xcb   :  { %vm283_vm11 = vcmp.eq.s32.totalorder %v278_v31, 2  ;;  %vm280_vm12 = vcmp.eq.s32.totalorder %v278_v31, 0  ;;  %vm279_vm13 = vcmp.lt.s32.totalorder %v278_v31, 2  ;;  %v385_v44 = vrot.slane %v4302_v5, %v384_v39 }
  0xcc   :  { %v155_v49 = vor.u32 %v154_v46, %v153_v45  ;;  %v158_v50 = vshll.u32 %v157_v47, 23  ;;  %v3670_v51 = vadd.s32 4294967294, %v252_v48  ;;  %v417_v46 = vld [vmem:[%s4834_s2] sm:$0xff] }
  0xcd   :  { %3876 = vmatprep.subr.mxu1 %v417_v46 }
  0xce   :  { %v159_v53 = vor.u32 4788187, %v158_v50  ;;  %vm3671_vm2 = vcmp.lt.s32.totalorder %v3670_v51, 0  ;;  %v162_v57 = vcvt.s32.f32 %v155_v49  ;;  %3877 = vmatpush3.msra.mxu1 %v417_v46 }
  0xcf   :  { %v255_v59 = vsel %vm3671_vm2, 0, %v3670_v51  ;;  %3881 = vmatprep.subr.mxu1 %v4238_v15  ;;  %vm404_vm2 = vcmp.eq.s32.totalorder %v4311_v13, 7 }
  0xd0   :  { %v160_v55 = vand.u32 2147483647, %v159_v53  ;;  %v256_v62 = vsub.s32 32, %v255_v59  ;;  %v260_v63 = vsub.s32 4294967266, %v255_v59  ;;  %v257_v0 = vshll.u32 %v248_v36, %v255_v59 }
  0xd2   :  { %v163_v37 = vmul.f32 %v162_v57, %v160_v55  ;;  %v258_v52 = vshrl.u32 %v240_v60, %v256_v62  ;;  %v261_v1 = vadd.s32 127, %v260_v63  ;;  %v3676_v60 = vld [vmem:[%s4834_s2 + $0x8] ss:$0 sm:$0xff] }
  0xd4   :  { %v164_v56 = vxor.u32 2147483648, %v163_v37  ;;  %v259_v61 = vor.u32 %v258_v52, %v257_v0  ;;  %v262_v2 = vshll.u32 %v261_v1, 23 }
  0xd6   :  { %v165_v58 = vsel %vm82_vm3, %v164_v56, %v163_v37  ;;  %v263_v7 = vor.u32 4788187, %v262_v2  ;;  %v266_v10 = vcvt.s32.f32 %v259_v61  ;;  %vm423_vm3 = vcmask 64512  }
  0xd7   :  { %v168_v6 = vsel %vm81_vm4, %v4319_v25, %v165_v58  ;;  %vm4246_vm4 = vmmov 0  }
  0xd8   :  { %4166 = vcosq.f32 %v168_v6  ;;  %v264_v9 = vand.u32 2147483647, %v263_v7  ;;  %3893 = vmatprep.mubr.msk.f32.mxu0 %vm4246_vm4, %v4238_v15 }
  0xd9   :  { %4168 = vsinq.f32 %v168_v6 }
  0xda   :  { %v267_v11 = vmul.f32 %v266_v10, %v264_v9 }
  0xdc   :  { %v268_v14 = vxor.u32 2147483648, %v267_v11  ;;  %v3875_v25 = vpop.f32.mrb[0].mxu0 }
  0xdd   :  { %v372_v45 = vpop.f32.mrb[1].mxu0 }
  0xde   :  { %v269_v29 = vsel %vm186_vm5, %v268_v14, %v267_v11  ;;  %vm874_vm5 = vcmp.ge.s32.totalorder %v4311_v13, 4 }
  0xdf   :  { %v272_v18 = vsel %vm185_vm6, %v4323_v33, %v269_v29  ;;  %vm875_vm6 = vcmp.lt.s32.totalorder %v4311_v13, 8 }
  0xe0   :  { %4170 = vcosq.f32 %v272_v18 }
  0xe1   :  { %4172 = vsinq.f32 %v272_v18 }
  0xe2   :  { %v4167_v19 = vpop.eup %4166 }
  0xe3   :  { %v4169_v21 = vpop.eup %4168  ;;  %v180_v22 = vxor.u32 2147483648, %v4167_v19 }
  0xe4   :  { %v177_v24 = vxor.u32 2147483648, %v4169_v21 }
  0xe5   :  { %v181_v26 = vsel %vm179_vm7, %v180_v22, %v4169_v21  ;;  %vm4444_vm7 = vmand %vm874_vm5, %vm875_vm6  ;;  %vm3576_vm5 = vcmask 162816   ;;  %vm3658_vm6 = vcmask 58368  }
  0xe6   :  { %v178_v28 = vsel %vm176_vm8, %v4167_v19, %v177_v24  ;;  %vm684_vm8 = vcmp.lt.s32.totalorder %v4311_v13, 4 }
  0xe7   :  { %v182_v40 = vsel %vm175_vm9, %v178_v28, %v181_v26  ;;  %vm1351_vm9 = vcmp.ge.s32.totalorder %v4311_v13, 8 }
  0xe8   :  { %v183_v30 = vsel %vm172_vm10, nan, %v182_v40  ;;  %vm1352_vm10 = vcmp.lt.s32.totalorder %v4311_v13, 12 }
  0xe9   :  { %407 = vperm.xlu1 %4164, %v183_v30  }
  0xea   :  { %v4171_v32 = vpop.eup %4170 }
  0xeb   :  { %v4173_v34 = vpop.eup %4172  ;;  %v284_v35 = vxor.u32 2147483648, %v4171_v32 }
  0xec   :  { %v281_v36 = vxor.u32 2147483648, %v4173_v34 }
  0xed   :  { %v285_v38 = vsel %vm283_vm11, %v284_v35, %v4173_v34  ;;  %vm4486_vm11 = vmand %vm1351_vm9, %vm1352_vm10 }
  0xee   :  { %v282_v42 = vsel %vm280_vm12, %v4171_v32, %v281_v36  ;;  %vm1518_vm12 = vcmask 1043456  }
  0xef   :  { %v286_v23 = vsel %vm279_vm13, %v282_v42, %v285_v38  ;;  %vm4253_vm13 = vmmov 1  }
  0xf0   :  { %v287_v43 = vsel %vm276_vm14, nan, %v286_v23  ;;  %vm4525_vm14 = vmpackc.low %vm1518_vm12, %vm4253_vm13 }
  0xf1   :  { %412 = vperm.xlu1 %4164, %v287_v43  }
  0xf5   :  { %387 = vbcast.lane.b32.xlu1 %v385_v44, 256 }
 0x11c   :  { %v395_v47 = vpop.permute.xlu1 %394 }
 0x120   :  { %v400_v48 = vpop.permute.xlu1 %399 }
 0x168   :  { %v408_v49 = vpop.permute.xlu1 %407 }
 0x170   :  { %v413_v33 = vpop.permute.xlu1 %412 }
 0x174   :  { %v388_v50 = vpop.permute.xlu1 %387 }
 0x175   :  { %v389_v5 = vsel %vm381_vm15, %v388_v50, %v372_v45  ;;  %v390_v51 = vsel %vm381_vm15, %v388_v50, %v3875_v25  ;;  %vm1511_vm15 = vcmask 97280  }
 0x176   :  { %v403_v53 = vsel %vm391_vm1, %v400_v48, %v390_v51  ;;  %v402_v55 = vsel %vm391_vm1, %v395_v47, %v389_v5  ;;  %vm1758_vm1 = vcmask 261120  }
 0x177   :  { %v4383_v57 = vsel %vm404_vm2, %v408_v49, %v402_v55  ;;  %v4385_v59 = vsel %vm404_vm2, %v413_v33, %v403_v53  ;;  %vm3402_vm2 = vcmask 1041409  }
 0x178   :  { %3878 = vmatprep.mubr.msk.f32.mxu1 %vm423_vm3, %v4383_v57 }
 0x179   :  { %3879 = vmatmul.mubr.msk.f32.vlgmr.msra.gmra.mrb[0].mxu1 %vm423_vm3, %v4385_v59 }
 0x17a   :  { %3883 = vmatprep.mubr.msk.f32.mxu1 %vm4246_vm4, %v4238_v15 }
 0x24c   :  { %v3880_v62 = vpop.f32.mrb[0].mxu1 }
 0x24d   :  { %v4398_v63 = vadd.f32 %v3880_v62, %v3676_v60  ;;  %v496_v37 = vpop.f32.mrb[1].mxu1 }
 0x24e   :  { %v4400_v41 = vadd.f32 %v3676_v60, %v496_v37 }
 0x24f   :  { %583 = vrot.lane.b32.xlu1 %v4398_v63, %s4247_s29 }
 0x250   :  { %506 = vrot.lane.b32.xlu0 %v4400_v41, %s4247_s29 }
 0x253   :  { %774 = vrot.lane.b32.xlu1 %v4398_v63, %s4248_s30 }
 0x254   :  { %696 = vrot.lane.b32.xlu0 %v4400_v41, %s4248_s30 }
 0x257   :  { %772 = vrot.lane.b32.xlu1 %v4398_v63, %s4249_s7 }
 0x258   :  { %694 = vrot.lane.b32.xlu0 %v4400_v41, %s4249_s7 }
 0x2c1   :  { %v584_v0 = vpop.permute.xlu1 %583 }
 0x2c2   :  { %v507_v52 = vpop.permute.xlu0 %506 }
 0x2c3   :  { %3882 = vmatpush3.xpose.msk.msra.mxu1 %vm26_vm0, %v507_v52 }
 0x2c4   :  { %3886 = vmatprep.subr.mxu1 %v4238_v15 }
 0x2c5   :  { %v775_v56 = vpop.permute.xlu1 %774 }
 0x2c6   :  { %3884 = vmatmul.mubr.msk.f32.vlgmr.msra.gmra.mrb[2].mxu1 %vm26_vm0, %v4400_v41  ;;  %v697_v1 = vpop.permute.xlu0 %696 }
 0x2c7   :  { %3887 = vmatpush3.xpose.msk.msra.mxu1 %vm26_vm0, %v584_v0  ;;  %3892 = vmatpush3.xpose.msk.msra.mxu0 %vm26_vm0, %v697_v1 }
 0x2c8   :  { %3888 = vmatprep.mubr.msk.f32.mxu1 %vm4246_vm4, %v4238_v15  ;;  %3896 = vmatprep.subr.mxu1 %v4238_v15 }
 0x2c9   :  { %3901 = vmatprep.subr.mxu0 %v4238_v15  ;;  %v773_v2 = vpop.permute.xlu1 %772 }
 0x2ca   :  { %3889 = vmatmul.mubr.msk.f32.vlgmr.msra.gmra.mrb[4].mxu1 %vm26_vm0, %v4398_v63  ;;  %v695_v61 = vpop.permute.xlu0 %694 }
 0x2cb   :  { %3894 = vmatmul.mubr.msk.f32.vlgmr.msra.gmra.mrb[2].mxu0 %vm26_vm0, %v695_v61  ;;  %3897 = vmatpush3.xpose.msk.msra.mxu1 %vm26_vm0, %v775_v56 }
 0x2cc   :  { %3898 = vmatprep.mubr.msk.f32.mxu1 %vm4246_vm4, %v4238_v15  ;;  %3903 = vmatprep.mubr.msk.f32.mxu0 %vm4246_vm4, %v4238_v15 }
 0x2cd   :  { %3906 = vmatprep.subr.mxu1 %v4238_v15 }
 0x2ce   :  { %3899 = vmatmul.mubr.msk.f32.vlgmr.msra.gmra.mrb[6].mxu1 %vm26_vm0, %v773_v2 }
 0x2cf   :  { %3908 = vmatprep.mubr.msk.f32.mxu1 %vm4246_vm4, %v4238_v15 }
 0x399   :  { %v578_v58 = vpop.f32.mrb[2].mxu1 }
 0x39a   :  { %v3885_v3 = vpop.f32.mrb[3].mxu1  ;;  %v659_v11 = vmul.f32 0.5, %v578_v58 }
 0x39c   :  { %v661_v18 = vsel %vm423_vm3, %v659_v11, -inf }
 0x39d   :  { %v655_v6 = vpop.f32.mrb[4].mxu1 }
 0x39e   :  { %v3890_v7 = vpop.f32.mrb[5].mxu1  ;;  %v768_v8 = vpop.f32.mrb[2].mxu0  ;;  %v660_v17 = vmul.f32 0.5, %v655_v6 }
 0x39f   :  { %v850_v9 = vmul.f32 0.5, %v768_v8  ;;  %v3895_v10 = vpop.f32.mrb[3].mxu0 }
 0x3a0   :  { %v664_v19 = vsel %vm423_vm3, %v660_v17, -inf }
 0x3a1   :  { %v846_v54 = vpop.f32.mrb[6].mxu1  ;;  %v852_v12 = vsel %vm423_vm3, %v850_v9, -inf }
 0x3a2   :  { %v851_v14 = vmul.f32 0.5, %v846_v54  ;;  %v3900_v29 = vpop.f32.mrb[7].mxu1  ;;  %853 = vmax.xlane.f32.xlu0 %v852_v12 }
 0x3a4   :  { %v855_v16 = vsel %vm423_vm3, %v851_v14, -inf }
 0x3a5   :  { %856 = vmax.xlane.f32.xlu1 %v855_v16 }
 0x3a6   :  { %662 = vmax.xlane.f32.xlu0 %v661_v18 }
 0x3aa   :  { %665 = vmax.xlane.f32.xlu0 %v664_v19 }
 0x3b6   :  { %686 = vrot.lane.b32.xlu1 %v4400_v41, %s4250_s8 }
 0x42f   :  { %v854_v20 = vpop.xlane.xlu0 %853 }
 0x430   :  { %v858_v21 = vsub.f32 %v850_v9, %v854_v20 }
 0x432   :  { %v860_v22 = vmul.f32 1.442695, %v858_v21  ;;  %v857_v24 = vpop.xlane.xlu1 %856 }
 0x433   :  { %v663_v26 = vpop.xlane.xlu0 %662  ;;  %v859_v40 = vsub.f32 %v851_v14, %v857_v24 }
 0x434   :  { %4174 = vpow2.f32 %v860_v22  ;;  %v667_v27 = vsub.f32 %v659_v11, %v663_v26 }
 0x435   :  { %v862_v35 = vmul.f32 1.442695, %v859_v40  ;;  %v1505_v40 = vld [vmem:[%s4835_s4 + $0x8] sm:$0xf] }
 0x436   :  { %v669_v30 = vmul.f32 1.442695, %v667_v27  ;;  %v4448_v31 = vpop.permute.xlu1 %686  ;;  %v1504_v27 = vld [vmem:[%s4835_s4] sm:$0xff] }
 0x437   :  { %3902 = vmatpush3.msk.msra.mxu0 %vm4444_vm7, %v4448_v31  ;;  %v666_v32 = vpop.xlane.xlu0 %665 }
 0x438   :  { %4176 = vpow2.f32 %v669_v30  ;;  %v668_v34 = vsub.f32 %v660_v17, %v666_v32  ;;  %3911 = vmatprep.subr.mxu0 %v4238_v15 }
 0x43a   :  { %v671_v36 = vmul.f32 1.442695, %v668_v34 }
 0x43c   :  { %4178 = vpow2.f32 %v671_v36 }
 0x43d   :  { %4180 = vpow2.f32 %v862_v35 }
 0x43e   :  { %v4175_v38 = vpop.eup %4174 }
 0x43f   :  { %v864_v39 = vsel %vm423_vm3, %v4175_v38, 0.0 }
 0x440   :  { %865 = vadd.xlane.f32.xlu1 %v864_v39 }
 0x442   :  { %v4177_v42 = vpop.eup %4176 }
 0x443   :  { %v673_v23 = vsel %vm423_vm3, %v4177_v42, 0.0 }
 0x444   :  { %674 = vadd.xlane.f32.xlu1 %v673_v23 }
 0x446   :  { %v4179_v43 = vpop.eup %4178 }
 0x447   :  { %v676_v25 = vsel %vm423_vm3, %v4179_v43, 0.0  ;;  %v4181_v44 = vpop.eup %4180 }
 0x448   :  { %677 = vadd.xlane.f32.xlu0 %v676_v25  ;;  %v867_v45 = vsel %vm423_vm3, %v4181_v44, 0.0 }
 0x44c   :  { %868 = vadd.xlane.f32.xlu0 %v867_v45 }
 0x455   :  { %1173 = vrot.lane.b32.xlu1 %v4400_v41, %s4251_s9 }
 0x459   :  { %1251 = vrot.lane.b32.xlu1 %v4398_v63, %s4251_s9 }
 0x45d   :  { %1249 = vrot.lane.b32.xlu1 %v4398_v63, %s4252_s10 }
 0x462   :  { %688 = vrot.lane.b32.xlu0 %v4398_v63, %s4250_s8 }
 0x466   :  { %1171 = vrot.lane.b32.xlu0 %v4400_v41, %s4252_s10 }
 0x4cd   :  { %v866_v46 = vpop.xlane.xlu1 %865 }
 0x4ce   :  { %4182 = vrcp.f32 %v866_v46 }
 0x4d1   :  { %v675_v47 = vpop.xlane.xlu1 %674 }
 0x4d2   :  { %4184 = vrcp.f32 %v675_v47 }
 0x4d5   :  { %v678_v48 = vpop.xlane.xlu0 %677  ;;  %v1174_v55 = vpop.permute.xlu1 %1173 }
 0x4d8   :  { %v4183_v49 = vpop.eup %4182 }
 0x4d9   :  { %v872_v33 = vmul.f32 %v4183_v49, %v4175_v38  ;;  %v869_v50 = vpop.xlane.xlu0 %868  ;;  %v1252_v0 = vpop.permute.xlu1 %1251  ;;  %v3703_v38 = vld [vmem:[%s4835_s4 + $0xc] ss:$0 sm:$0xff] }
 0x4da   :  { %4186 = vrcp.f32 %v869_v50 }
 0x4db   :  { %3904 = vmatmul.mubr.msk.f32.vlgmr.msra.gmra.mrb[4].mxu0 %vm423_vm3, %v872_v33  ;;  %4188 = vrcp.f32 %v678_v48 }
 0x4dc   :  { %3912 = vmatpush3.msk.msra.mxu0 %vm684_vm8, %v4448_v31  ;;  %3913 = vmatprep.mubr.msk.f32.mxu0 %vm4246_vm4, %v4238_v15  ;;  %v4185_v51 = vpop.eup %4184 }
 0x4dd   :  { %v689_v5 = vpop.permute.xlu0 %688  ;;  %3921 = vmatprep.subr.mxu0 %v4238_v15  ;;  %v681_v53 = vmul.f32 %v4185_v51, %v4177_v42  ;;  %v1250_v1 = vpop.permute.xlu1 %1249 }
 0x4de   :  { %3907 = vmatpush3.msk.msra.mxu1 %vm4444_vm7, %v689_v5 }
 0x4df   :  { %3916 = vmatprep.subr.mxu1 %v4238_v15 }
 0x4e1   :  { %v1172_v37 = vpop.permute.xlu0 %1171 }
 0x4e3   :  { %3914 = vmatmul.mubr.msk.f32.vlgmr.msra.gmra.mrb[4].mxu0 %vm423_vm3, %v681_v53 }
 0x4e4   :  { %v4187_v60 = vpop.eup %4186  ;;  %3922 = vmatpush3.xpose.msk.msra.mxu0 %vm26_vm0, %v1174_v55  ;;  %3923 = vmatprep.mubr.msk.f32.mxu0 %vm4246_vm4, %v4238_v15 }
 0x4e5   :  { %v873_v62 = vmul.f32 %v4187_v60, %v4181_v44  ;;  %3931 = vmatprep.subr.mxu0 %v4238_v15  ;;  %v4189_v41 = vpop.eup %4188 }
 0x4e6   :  { %v682_v52 = vmul.f32 %v4189_v41, %v4179_v43 }
 0x4e7   :  { %3909 = vmatmul.mubr.msk.f32.vlgmr.msra.gmra.mrb[8].mxu1 %vm423_vm3, %v873_v62  ;;  %3924 = vmatmul.mubr.msk.f32.vlgmr.msra.gmra.mrb[6].mxu0 %vm26_vm0, %v1172_v37 }
 0x4e8   :  { %3917 = vmatpush3.msk.msra.mxu1 %vm684_vm8, %v689_v5  ;;  %3932 = vmatpush3.msk.msra.mxu0 %vm4486_vm11, %v4448_v31  ;;  %v4083_v31 = vpack.c.bf16 %v1505_v40, %v1504_v27 }
 0x4e9   :  { %3918 = vmatprep.mubr.msk.f32.mxu1 %vm4246_vm4, %v4238_v15  ;;  %3926 = vmatprep.subr.mxu1 %v4238_v15 }
 0x4ea   :  { %3933 = vmatprep.mubr.msk.f32.mxu0 %vm4246_vm4, %v4238_v15  ;;  %4085 = vmatprep.subr.msk.bf16.mxu0 %vm4525_vm14, %v4083_v31 }
 0x4ef   :  { %3919 = vmatmul.mubr.msk.f32.vlgmr.msra.gmra.mrb[8].mxu1 %vm423_vm3, %v682_v52 }
 0x4f0   :  { %3927 = vmatpush3.xpose.msk.msra.mxu1 %vm26_vm0, %v1252_v0  ;;  %3928 = vmatprep.mubr.msk.f32.mxu1 %vm4246_vm4, %v4238_v15 }
 0x4f1   :  { %3936 = vmatprep.subr.mxu1 %v4238_v15 }
 0x4f3   :  { %3929 = vmatmul.mubr.msk.f32.vlgmr.msra.gmra.mrb[10].mxu1 %vm26_vm0, %v1250_v1 }
 0x4f4   :  { %3937 = vmatpush3.msk.msra.mxu1 %vm4486_vm11, %v689_v5  ;;  %3938 = vmatprep.mubr.msk.f32.mxu1 %vm4246_vm4, %v4238_v15 }
 0x5ba   :  { %v1245_v56 = vpop.f32.mrb[6].mxu0 }
 0x5bb   :  { %v1327_v61 = vmul.f32 0.5, %v1245_v56  ;;  %v3925_v2 = vpop.f32.mrb[7].mxu0 }
 0x5bd   :  { %v1329_v58 = vsel %vm423_vm3, %v1327_v61, -inf }
 0x5be   :  { %1330 = vmax.xlane.f32.xlu0 %v1329_v58 }
 0x5c6   :  { %v1323_v3 = vpop.f32.mrb[10].mxu1 }
 0x5c7   :  { %v1328_v6 = vmul.f32 0.5, %v1323_v3  ;;  %v3930_v7 = vpop.f32.mrb[11].mxu1 }
 0x5c8   :  { %v1660_v7 = vld [vmem:[%s4836_s3] sm:$0xff] }
 0x5c9   :  { %v1332_v8 = vsel %vm423_vm3, %v1328_v6, -inf  ;;  %3948 = vmatprep.subr.mxu1 %v1660_v7 }
 0x5ca   :  { %1333 = vmax.xlane.f32.xlu1 %v1332_v8  ;;  %v1749_v8 = vld [vmem:[%s4835_s4 + $0xe] sm:$0xff] }
 0x64b   :  { %v1331_v9 = vpop.xlane.xlu0 %1330 }
 0x64c   :  { %v1335_v10 = vsub.f32 %v1327_v61, %v1331_v9  ;;  %v1750_v9 = vld [vmem:[%s4835_s4 + $0x16] sm:$0xff] }
 0x64e   :  { %v1337_v11 = vmul.f32 1.442695, %v1335_v10  ;;  %v4089_v10 = vpack.c.bf16 %v1750_v9, %v1749_v8 }
 0x650   :  { %4190 = vpow2.f32 %v1337_v11 }
 0x657   :  { %v1334_v54 = vpop.xlane.xlu1 %1333 }
 0x658   :  { %v1336_v12 = vsub.f32 %v1328_v6, %v1334_v54 }
 0x65a   :  { %v4191_v14 = vpop.eup %4190  ;;  %v1339_v29 = vmul.f32 1.442695, %v1336_v12 }
 0x65b   :  { %v1341_v16 = vsel %vm423_vm3, %v4191_v14, 0.0 }
 0x65c   :  { %4192 = vpow2.f32 %v1339_v29  ;;  %1342 = vadd.xlane.f32.xlu0 %v1341_v16 }
 0x666   :  { %v4193_v17 = vpop.eup %4192 }
 0x667   :  { %v1344_v18 = vsel %vm423_vm3, %v4193_v17, 0.0 }
 0x668   :  { %1345 = vadd.xlane.f32.xlu0 %v1344_v18 }
 0x6e9   :  { %v1343_v19 = vpop.xlane.xlu0 %1342 }
 0x6ea   :  { %4194 = vrcp.f32 %v1343_v19 }
 0x6f4   :  { %v4195_v20 = vpop.eup %4194 }
 0x6f5   :  { %v1349_v21 = vmul.f32 %v4195_v20, %v4191_v14  ;;  %v1346_v22 = vpop.xlane.xlu0 %1345 }
 0x6f6   :  { %4196 = vrcp.f32 %v1346_v22 }
 0x6f7   :  { %3934 = vmatmul.mubr.msk.f32.vlgmr.msra.gmra.mrb[4].mxu0 %vm423_vm3, %v1349_v21 }
 0x6f8   :  { %4088 = vmatpush3.bf16.msk.msra.mxu0 %vm4525_vm14, %v4083_v31 }
 0x6f9   :  { %4090 = vmatprep.subr.bf16.mxu0 %v4089_v10 }
 0x700   :  { %v4197_v24 = vpop.eup %4196 }
 0x701   :  { %v1350_v26 = vmul.f32 %v4197_v24, %v4193_v17 }
 0x703   :  { %3939 = vmatmul.mubr.msk.f32.vlgmr.msra.gmra.mrb[8].mxu1 %vm423_vm3, %v1350_v26 }
 0x704   :  { %3949 = vmatpush3.msra.mxu1 %v1660_v7 }
 0x7ca   :  { %v1425_v32 = vpop.f32.mrb[4].mxu0 }
 0x7cb   :  { %v3935_v34 = vpop.f32.mrb[5].mxu0  ;;  %3945 = vmatprep.mubr.msk.f32.mxu0 %vm1511_vm15, %v1425_v32 }
 0x7d6   :  { %v1498_v35 = vpop.f32.mrb[8].mxu1 }
 0x7d7   :  { %v3940_v36 = vpop.f32.mrb[9].mxu1  ;;  %3946 = vmatmul.mubr.msk.f32.vlgmr.msra.gmra.mrb[8].mxu0 %vm1511_vm15, %v1498_v35 }
 0x7d8   :  { %4092 = vmatpush3.bf16.msra.mxu0 %v4089_v10 }
 0x8aa   :  { %v3947_v39 = vpop.f32.mrb[8].mxu0 }
 0x8ab   :  { %v1594_v42 = vadd.f32 %v3947_v39, %v3703_v38  ;;  %v1588_v23 = vpop.f32.mrb[9].mxu0 }
 0x8ac   :  { %v1589_v43 = vadd.f32 %v3703_v38, %v1588_v23  ;;  %v1654_v38 = vld [vmem:[%s4835_s4 + $0x2e] sm:$0xff] }
 0x8ad   :  { %v1598_v25 = vadd.f32 %v1594_v42, %v4385_v59 }
 0x8ae   :  { %v1597_v44 = vadd.f32 %v1589_v43, %v4383_v57 }
 0x8af   :  { %v1602_v45 = vsel %vm423_vm3, %v1598_v25, 0.0 }
 0x8b0   :  { %1603 = vadd.xlane.f32.xlu0 %v1602_v45  ;;  %v1599_v46 = vsel %vm423_vm3, %v1597_v44, 0.0 }
 0x8b1   :  { %1600 = vadd.xlane.f32.xlu1 %v1599_v46 }
 0x93d   :  { %v1604_v47 = vpop.xlane.xlu0 %1603 }
 0x93e   :  { %v1607_v48 = vmul.f32 0.125, %v1604_v47  ;;  %v1601_v49 = vpop.xlane.xlu1 %1600  ;;  %v1751_v47 = vld [vmem:[%s4835_s4 + $0x1e] sm:$0xff] }
 0x93f   :  { %v1606_v33 = vmul.f32 0.125, %v1601_v49 }
 0x940   :  { %v1614_v50 = vrot.slane %v1607_v48, 4 }
 0x941   :  { %v1608_v5 = vrot.slane %v1606_v33, 4 }
 0x942   :  { %v1615_v51 = vadd.f32 %v1614_v50, %v1607_v48  ;;  %v1752_v48 = vld [vmem:[%s4835_s4 + $0x26] sm:$0xff] }
 0x943   :  { %v1609_v53 = vadd.f32 %v1608_v5, %v1606_v33  ;;  %v4093_v49 = vpack.c.bf16 %v1752_v48, %v1751_v47  ;;  %v3707_v33 = vld [vmem:[%s4836_s3 + $0x8] ss:$0 sm:$0xff] }
 0x944   :  { %v1616_v55 = vrot.slane %v1615_v51, 2 }
 0x945   :  { %v1610_v60 = vrot.slane %v1609_v53, 2  ;;  %4094 = vmatprep.subr.bf16.mxu0 %v4093_v49 }
 0x946   :  { %v1617_v62 = vadd.f32 %v1616_v55, %v1615_v51  ;;  %4096 = vmatpush3.bf16.msra.mxu0 %v4093_v49 }
 0x947   :  { %v1611_v59 = vadd.f32 %v1610_v60, %v1609_v53  ;;  %3974 = vmatprep.subr.mxu0 %v4238_v15 }
 0x948   :  { %v1618_v37 = vrot.slane %v1617_v62, 1 }
 0x949   :  { %v1612_v57 = vrot.slane %v1611_v59, 1 }
 0x94a   :  { %v1619_v41 = vadd.f32 %v1618_v37, %v1617_v62  ;;  %v3710_v62 = vld [vmem:[%s4835_s4 + $0xd] ss:$0 sm:$0xff] }
 0x94b   :  { %v1613_v0 = vadd.f32 %v1612_v57, %v1611_v59 }
 0x94c   :  { %v1621_v52 = vmul.f32 0.125, %v1619_v41 }
 0x94d   :  { %v1620_v1 = vmul.f32 0.125, %v1613_v0 }
 0x94e   :  { %v1623_v56 = vsub.f32 %v1598_v25, %v1621_v52  ;;  %v1657_v25 = vld [vmem:[%s4835_s4 + $0x36] sm:$0xff] }
 0x94f   :  { %v1622_v61 = vsub.f32 %v1597_v44, %v1620_v1 }
 0x950   :  { %v1625_v2 = vmul.f32 %v1623_v56, %v1623_v56 }
 0x951   :  { %v1624_v58 = vmul.f32 %v1622_v61, %v1622_v61 }
 0x952   :  { %v1629_v3 = vsel %vm423_vm3, %v1625_v2, 0.0 }
 0x953   :  { %1630 = vadd.xlane.f32.xlu0 %v1629_v3  ;;  %v1626_v6 = vsel %vm423_vm3, %v1624_v58, 0.0 }
 0x954   :  { %1627 = vadd.xlane.f32.xlu1 %v1626_v6 }
 0x9e0   :  { %v1631_v11 = vpop.xlane.xlu0 %1630 }
 0x9e1   :  { %v1633_v54 = vmul.f32 0.125, %v1631_v11  ;;  %v1628_v12 = vpop.xlane.xlu1 %1627 }
 0x9e2   :  { %v1632_v14 = vmul.f32 0.125, %v1628_v12 }
 0x9e3   :  { %v1640_v29 = vrot.slane %v1633_v54, 4 }
 0x9e4   :  { %v1634_v16 = vrot.slane %v1632_v14, 4 }
 0x9e5   :  { %v1641_v17 = vadd.f32 %v1640_v29, %v1633_v54 }
 0x9e6   :  { %v1635_v18 = vadd.f32 %v1634_v16, %v1632_v14 }
 0x9e7   :  { %v1642_v19 = vrot.slane %v1641_v17, 2 }
 0x9e8   :  { %v1636_v20 = vrot.slane %v1635_v18, 2 }
 0x9e9   :  { %v1643_v21 = vadd.f32 %v1642_v19, %v1641_v17 }
 0x9ea   :  { %v1637_v22 = vadd.f32 %v1636_v20, %v1635_v18 }
 0x9eb   :  { %v1644_v24 = vrot.slane %v1643_v21, 1 }
 0x9ec   :  { %v1638_v26 = vrot.slane %v1637_v22, 1 }
 0x9ed   :  { %v1645_v27 = vadd.f32 %v1644_v24, %v1643_v21 }
 0x9ee   :  { %v1639_v40 = vadd.f32 %v1638_v26, %v1637_v22 }
 0x9ef   :  { %v1647_v31 = vmul.f32 0.125, %v1645_v27 }
 0x9f0   :  { %v1646_v32 = vmul.f32 0.125, %v1639_v40  ;;  %v3713_v40 = vld [vmem:[%s4834_s2 + $0x10] sm:$0xff] }
 0x9f1   :  { %v1649_v34 = vadd.f32 1e-05, %v1647_v31  ;;  %3964 = vmatprep.subr.mxu1 %v3713_v40 }
 0x9f2   :  { %v1648_v35 = vadd.f32 1e-05, %v1646_v32 }
 0x9f3   :  { %4198 = vrsqrt.f32 %v1649_v34 }
 0x9f4   :  { %4200 = vrsqrt.f32 %v1648_v35 }
 0x9fd   :  { %v4199_v36 = vpop.eup %4198 }
 0x9fe   :  { %v4201_v39 = vpop.eup %4200  ;;  %v1653_v42 = vmul.f32 %v4199_v36, %v1623_v56 }
 0x9ff   :  { %v1652_v23 = vmul.f32 %v4201_v39, %v1622_v61 }
 0xa00   :  { %v1656_v43 = vmul.f32 %v1654_v38, %v1653_v42 }
 0xa01   :  { %v1655_v44 = vmul.f32 %v1654_v38, %v1652_v23 }
 0xa02   :  { %v1659_v46 = vadd.f32 %v1657_v25, %v1656_v43 }
 0xa03   :  { %v1658_v45 = vadd.f32 %v1657_v25, %v1655_v44 }
 0xa05   :  { %3950 = vmatprep.mubr.msk.f32.mxu1 %vm423_vm3, %v1658_v45 }
 0xa06   :  { %3951 = vmatmul.mubr.msk.f32.vlgmr.msra.gmra.mrb[12].mxu1 %vm423_vm3, %v1659_v46 }
 0xa07   :  { %3965 = vmatpush3.msra.mxu1 %v3713_v40 }
 0xa08   :  { %3969 = vmatprep.subr.mxu1 %v4238_v15 }
 0xad9   :  { %v3952_v50 = vpop.f32.mrb[12].mxu1 }
 0xada   :  { %v1744_v5 = vadd.f32 %v3952_v50, %v3707_v33  ;;  %v1738_v51 = vpop.f32.mrb[13].mxu1 }
 0xadb   :  { %v1739_v53 = vadd.f32 %v3707_v33, %v1738_v51 }
 0xadc   :  { %v1748_v60 = vmax.f32 %v1744_v5, 0.0 }
 0xadd   :  { %v1747_v55 = vmax.f32 %v1739_v53, 0.0  ;;  %v1896_v53 = vld [vmem:[%s4835_s4 + $0x3e] sm:$0xff] }
 0xadf   :  { %3961 = vmatprep.mubr.msk.f32.mxu0 %vm1758_vm1, %v1747_v55 }
 0xae0   :  { %3962 = vmatmul.mubr.msk.f32.vlgmr.msra.gmra.mrb[10].mxu0 %vm1758_vm1, %v1748_v60 }
 0xae1   :  { %3976 = vmatprep.mubr.msk.f32.mxu0 %vm4246_vm4, %v4238_v15 }
 0xbb3   :  { %v3963_v59 = vpop.f32.mrb[10].mxu0 }
 0xbb4   :  { %v1837_v37 = vadd.f32 %v3963_v59, %v3710_v62  ;;  %v1831_v57 = vpop.f32.mrb[11].mxu0 }
 0xbb5   :  { %v1832_v41 = vadd.f32 %v3710_v62, %v1831_v57 }
 0xbb6   :  { %v1841_v0 = vadd.f32 %v1837_v37, %v1659_v46  ;;  %v1899_v37 = vld [vmem:[%s4835_s4 + $0x46] sm:$0xff] }
 0xbb7   :  { %v1840_v52 = vadd.f32 %v1832_v41, %v1658_v45 }
 0xbb8   :  { %v1845_v1 = vsel %vm423_vm3, %v1841_v0, 0.0 }
 0xbb9   :  { %1846 = vadd.xlane.f32.xlu0 %v1845_v1  ;;  %v1842_v56 = vsel %vm423_vm3, %v1840_v52, 0.0 }
 0xbba   :  { %1843 = vadd.xlane.f32.xlu1 %v1842_v56 }
 0xc46   :  { %v1847_v61 = vpop.xlane.xlu0 %1846 }
 0xc47   :  { %v1849_v2 = vmul.f32 0.125, %v1847_v61  ;;  %v1844_v58 = vpop.xlane.xlu1 %1843 }
 0xc48   :  { %v1848_v3 = vmul.f32 0.125, %v1844_v58 }
 0xc49   :  { %v1856_v6 = vrot.slane %v1849_v2, 4 }
 0xc4a   :  { %v1850_v7 = vrot.slane %v1848_v3, 4 }
 0xc4b   :  { %v1857_v8 = vadd.f32 %v1856_v6, %v1849_v2 }
 0xc4c   :  { %v1851_v9 = vadd.f32 %v1850_v7, %v1848_v3 }
 0xc4d   :  { %v1858_v10 = vrot.slane %v1857_v8, 2 }
 0xc4e   :  { %v1852_v11 = vrot.slane %v1851_v9, 2 }
 0xc4f   :  { %v1859_v54 = vadd.f32 %v1858_v10, %v1857_v8 }
 0xc50   :  { %v1853_v12 = vadd.f32 %v1852_v11, %v1851_v9 }
 0xc51   :  { %v1860_v14 = vrot.slane %v1859_v54, 1 }
 0xc52   :  { %v1854_v29 = vrot.slane %v1853_v12, 1 }
 0xc53   :  { %v1861_v16 = vadd.f32 %v1860_v14, %v1859_v54 }
 0xc54   :  { %v1855_v17 = vadd.f32 %v1854_v29, %v1853_v12 }
 0xc55   :  { %v1863_v18 = vmul.f32 0.125, %v1861_v16 }
 0xc56   :  { %v1862_v19 = vmul.f32 0.125, %v1855_v17 }
 0xc57   :  { %v1865_v20 = vsub.f32 %v1841_v0, %v1863_v18 }
 0xc58   :  { %v1864_v21 = vsub.f32 %v1840_v52, %v1862_v19  ;;  %v3715_v52 = vld [vmem:[%s4834_s2 + $0x18] ss:$0 sm:$0xff] }
 0xc59   :  { %v1867_v22 = vmul.f32 %v1865_v20, %v1865_v20 }
 0xc5a   :  { %v1866_v24 = vmul.f32 %v1864_v21, %v1864_v21 }
 0xc5b   :  { %v1871_v26 = vsel %vm423_vm3, %v1867_v22, 0.0 }
 0xc5c   :  { %1872 = vadd.xlane.f32.xlu0 %v1871_v26  ;;  %v1868_v27 = vsel %vm423_vm3, %v1866_v24, 0.0 }
 0xc5d   :  { %1869 = vadd.xlane.f32.xlu1 %v1868_v27 }
 0xce9   :  { %v1873_v31 = vpop.xlane.xlu0 %1872 }
 0xcea   :  { %v1875_v32 = vmul.f32 0.125, %v1873_v31  ;;  %v1870_v34 = vpop.xlane.xlu1 %1869 }
 0xceb   :  { %v1874_v35 = vmul.f32 0.125, %v1870_v34 }
 0xcec   :  { %v1882_v36 = vrot.slane %v1875_v32, 4 }
 0xced   :  { %v1876_v38 = vrot.slane %v1874_v35, 4 }
 0xcee   :  { %v1883_v39 = vadd.f32 %v1882_v36, %v1875_v32 }
 0xcef   :  { %v1877_v42 = vadd.f32 %v1876_v38, %v1874_v35 }
 0xcf0   :  { %v1884_v23 = vrot.slane %v1883_v39, 2 }
 0xcf1   :  { %v1878_v43 = vrot.slane %v1877_v42, 2 }
 0xcf2   :  { %v1885_v25 = vadd.f32 %v1884_v23, %v1883_v39 }
 0xcf3   :  { %v1879_v44 = vadd.f32 %v1878_v43, %v1877_v42 }
 0xcf4   :  { %v1886_v45 = vrot.slane %v1885_v25, 1 }
 0xcf5   :  { %v1880_v46 = vrot.slane %v1879_v44, 1 }
 0xcf6   :  { %v1887_v47 = vadd.f32 %v1886_v45, %v1885_v25 }
 0xcf7   :  { %v1881_v48 = vadd.f32 %v1880_v46, %v1879_v44 }
 0xcf8   :  { %v1889_v49 = vmul.f32 0.125, %v1887_v47 }
 0xcf9   :  { %v1888_v33 = vmul.f32 0.125, %v1881_v48 }
 0xcfa   :  { %v1891_v50 = vadd.f32 1e-05, %v1889_v49 }
 0xcfb   :  { %v1890_v5 = vadd.f32 1e-05, %v1888_v33 }
 0xcfc   :  { %4202 = vrsqrt.f32 %v1891_v50 }
 0xcfd   :  { %4204 = vrsqrt.f32 %v1890_v5 }
 0xd06   :  { %v4203_v51 = vpop.eup %4202 }
 0xd07   :  { %v4205_v55 = vpop.eup %4204  ;;  %v1895_v60 = vmul.f32 %v4203_v51, %v1865_v20 }
 0xd08   :  { %v1894_v62 = vmul.f32 %v4205_v55, %v1864_v21 }
 0xd09   :  { %v1898_v59 = vmul.f32 %v1896_v53, %v1895_v60 }
 0xd0a   :  { %v1897_v57 = vmul.f32 %v1896_v53, %v1894_v62 }
 0xd0b   :  { %v4594_v0 = vadd.f32 %v1899_v37, %v1898_v59 }
 0xd0c   :  { %v4592_v41 = vadd.f32 %v1899_v37, %v1897_v57 }
 0xd0e   :  { %3966 = vmatprep.mubr.msk.f32.mxu1 %vm423_vm3, %v4592_v41 }
 0xd0f   :  { %3967 = vmatmul.mubr.msk.f32.vlgmr.msra.gmra.mrb[14].mxu1 %vm423_vm3, %v4594_v0 }
 0xd10   :  { %3971 = vmatprep.mubr.msk.f32.mxu1 %vm4246_vm4, %v4238_v15 }
 0xde2   :  { %v3968_v1 = vpop.f32.mrb[14].mxu1 }
 0xde3   :  { %v4605_v56 = vadd.f32 %v3968_v1, %v3715_v52  ;;  %v1981_v61 = vpop.f32.mrb[15].mxu1 }
 0xde4   :  { %v4611_v2 = vadd.f32 %v3715_v52, %v1981_v61 }
 0xde5   :  { %2256 = vrot.lane.b32.xlu1 %v4605_v56, %s4248_s30  ;;  %2068 = vrot.lane.b32.xlu0 %v4605_v56, %s4247_s29 }
 0xde9   :  { %2176 = vrot.lane.b32.xlu0 %v4611_v2, %s4249_s7  ;;  %1991 = vrot.lane.b32.xlu1 %v4611_v2, %s4247_s29 }
 0xded   :  { %2178 = vrot.lane.b32.xlu1 %v4611_v2, %s4248_s30 }
 0xdf1   :  { %2254 = vrot.lane.b32.xlu1 %v4605_v56, %s4249_s7 }
 0xe57   :  { %v2257_v58 = vpop.permute.xlu1 %2256  ;;  %v2069_v3 = vpop.permute.xlu0 %2068 }
 0xe58   :  { %3975 = vmatpush3.xpose.msk.msra.mxu0 %vm26_vm0, %v2069_v3 }
 0xe59   :  { %3984 = vmatprep.subr.mxu0 %v4238_v15 }
 0xe5b   :  { %3977 = vmatmul.mubr.msk.f32.vlgmr.msra.gmra.mrb[12].mxu0 %vm26_vm0, %v4605_v56  ;;  %v1992_v6 = vpop.permute.xlu1 %1991  ;;  %v2177_v8 = vpop.permute.xlu0 %2176 }
 0xe5c   :  { %3970 = vmatpush3.xpose.msk.msra.mxu1 %vm26_vm0, %v1992_v6  ;;  %3985 = vmatpush3.xpose.msk.msra.mxu0 %vm26_vm0, %v2257_v58 }
 0xe5d   :  { %3979 = vmatprep.subr.mxu1 %v4238_v15  ;;  %3986 = vmatprep.mubr.msk.f32.mxu0 %vm4246_vm4, %v4238_v15 }
 0xe5e   :  { %3994 = vmatprep.subr.mxu0 %v4238_v15 }
 0xe5f   :  { %3972 = vmatmul.mubr.msk.f32.vlgmr.msra.gmra.mrb[16].mxu1 %vm26_vm0, %v4611_v2  ;;  %v2179_v7 = vpop.permute.xlu1 %2178 }
 0xe60   :  { %3980 = vmatpush3.xpose.msk.msra.mxu1 %vm26_vm0, %v2179_v7  ;;  %3981 = vmatprep.mubr.msk.f32.mxu1 %vm4246_vm4, %v4238_v15 }
 0xe61   :  { %3989 = vmatprep.subr.mxu1 %v4238_v15 }
 0xe63   :  { %3982 = vmatmul.mubr.msk.f32.vlgmr.msra.gmra.mrb[18].mxu1 %vm26_vm0, %v2177_v8  ;;  %v2255_v9 = vpop.permute.xlu1 %2254 }
 0xe64   :  { %3987 = vmatmul.mubr.msk.f32.vlgmr.msra.gmra.mrb[14].mxu0 %vm26_vm0, %v2255_v9  ;;  %3991 = vmatprep.mubr.msk.f32.mxu1 %vm4246_vm4, %v4238_v15 }
 0xe65   :  { %3996 = vmatprep.mubr.msk.f32.mxu0 %vm4246_vm4, %v4238_v15 }
 0xf2e   :  { %v2140_v10 = vpop.f32.mrb[12].mxu0 }
 0xf2f   :  { %v3978_v11 = vpop.f32.mrb[13].mxu0  ;;  %v2145_v24 = vmul.f32 0.5, %v2140_v10 }
 0xf31   :  { %v2149_v27 = vsel %vm423_vm3, %v2145_v24, -inf }
 0xf32   :  { %v2063_v54 = vpop.f32.mrb[16].mxu1 }
 0xf33   :  { %v3973_v12 = vpop.f32.mrb[17].mxu1  ;;  %v2144_v20 = vmul.f32 0.5, %v2063_v54 }
 0xf35   :  { %v2146_v26 = vsel %vm423_vm3, %v2144_v20, -inf }
 0xf36   :  { %v2250_v14 = vpop.f32.mrb[18].mxu1 }
 0xf37   :  { %v2332_v29 = vmul.f32 0.5, %v2250_v14  ;;  %v3983_v16 = vpop.f32.mrb[19].mxu1  ;;  %v2328_v17 = vpop.f32.mrb[14].mxu0 }
 0xf38   :  { %v2333_v18 = vmul.f32 0.5, %v2328_v17  ;;  %v3988_v19 = vpop.f32.mrb[15].mxu0 }
 0xf39   :  { %v2334_v21 = vsel %vm423_vm3, %v2332_v29, -inf }
 0xf3a   :  { %2335 = vmax.xlane.f32.xlu0 %v2334_v21  ;;  %v2337_v22 = vsel %vm423_vm3, %v2333_v18, -inf }
 0xf3b   :  { %2338 = vmax.xlane.f32.xlu1 %v2337_v22 }
 0xf3e   :  { %2147 = vmax.xlane.f32.xlu0 %v2146_v26 }
 0xf42   :  { %2150 = vmax.xlane.f32.xlu0 %v2149_v27 }
 0xf4c   :  { %2168 = vrot.lane.b32.xlu1 %v4611_v2, %s4250_s8 }
 0xfc7   :  { %v2336_v40 = vpop.xlane.xlu0 %2335 }
 0xfc8   :  { %v2339_v31 = vpop.xlane.xlu1 %2338  ;;  %v2340_v49 = vsub.f32 %v2332_v29, %v2336_v40 }
 0xfc9   :  { %v2341_v36 = vsub.f32 %v2333_v18, %v2339_v31 }
 0xfca   :  { %v2342_v33 = vmul.f32 1.442695, %v2340_v49 }
 0xfcb   :  { %v2148_v32 = vpop.xlane.xlu0 %2147  ;;  %v2344_v23 = vmul.f32 1.442695, %v2341_v36  ;;  %v3743_v36 = vld [vmem:[%s4835_s4 + $0x58] sm:$0xf] }
 0xfcc   :  { %v2152_v34 = vsub.f32 %v2144_v20, %v2148_v32  ;;  %v4649_v35 = vpop.permute.xlu1 %2168 }
 0xfcd   :  { %3990 = vmatpush3.msk.msra.mxu1 %vm4444_vm7, %v4649_v35 }
 0xfce   :  { %v2154_v38 = vmul.f32 1.442695, %v2152_v34  ;;  %3999 = vmatprep.subr.mxu1 %v4238_v15 }
 0xfcf   :  { %v2151_v39 = vpop.xlane.xlu0 %2150 }
 0xfd0   :  { %4206 = vpow2.f32 %v2154_v38  ;;  %v2153_v42 = vsub.f32 %v2145_v24, %v2151_v39 }
 0xfd2   :  { %v2156_v43 = vmul.f32 1.442695, %v2153_v42 }
 0xfd4   :  { %4208 = vpow2.f32 %v2156_v43 }
 0xfd5   :  { %4210 = vpow2.f32 %v2344_v23 }
 0xfd6   :  { %4212 = vpow2.f32 %v2342_v33 }
 0xfda   :  { %v4207_v25 = vpop.eup %4206 }
 0xfdb   :  { %v2158_v44 = vsel %vm423_vm3, %v4207_v25, 0.0 }
 0xfdc   :  { %2159 = vadd.xlane.f32.xlu1 %v2158_v44 }
 0xfde   :  { %v4209_v45 = vpop.eup %4208 }
 0xfdf   :  { %v2161_v46 = vsel %vm423_vm3, %v4209_v45, 0.0  ;;  %v4211_v47 = vpop.eup %4210 }
 0xfe0   :  { %2162 = vadd.xlane.f32.xlu0 %v2161_v46  ;;  %v2349_v48 = vsel %vm423_vm3, %v4211_v47, 0.0  ;;  %v4213_v50 = vpop.eup %4212 }
 0xfe1   :  { %v2346_v5 = vsel %vm423_vm3, %v4213_v50, 0.0 }
 0xfe4   :  { %2350 = vadd.xlane.f32.xlu0 %v2349_v48 }
 0xfed   :  { %2652 = vrot.lane.b32.xlu1 %v4611_v2, %s4251_s9 }
 0xffa   :  { %2170 = vrot.lane.b32.xlu0 %v4605_v56, %s4250_s8 }
 0xffe   :  { %2650 = vrot.lane.b32.xlu0 %v4611_v2, %s4252_s10 }
0x1011   :  { %2347 = vadd.xlane.f32.xlu1 %v2346_v5 }
0x1022   :  { %2730 = vrot.lane.b32.xlu1 %v4605_v56, %s4251_s9 }
0x1026   :  { %2728 = vrot.lane.b32.xlu1 %v4605_v56, %s4252_s10 }
0x1069   :  { %v2160_v28 = vpop.xlane.xlu1 %2159 }
0x106d   :  { %v2163_v51 = vpop.xlane.xlu0 %2162  ;;  %v2653_v57 = vpop.permute.xlu1 %2652 }
0x1071   :  { %v2351_v53 = vpop.xlane.xlu0 %2350 }
0x1072   :  { %4214 = vrcp.f32 %v2351_v53 }
0x1073   :  { %4216 = vrcp.f32 %v2163_v51 }
0x1075   :  { %v2171_v55 = vpop.permute.xlu0 %2170 }
0x1076   :  { %3995 = vmatpush3.msk.msra.mxu0 %vm4444_vm7, %v2171_v55 }
0x1077   :  { %4004 = vmatprep.subr.mxu0 %v4238_v15 }
0x1079   :  { %v2651_v6 = vpop.permute.xlu0 %2650 }
0x107c   :  { %v4215_v60 = vpop.eup %4214 }
0x107d   :  { %v2355_v62 = vmul.f32 %v4215_v60, %v4211_v47  ;;  %v4217_v59 = vpop.eup %4216 }
0x107e   :  { %v2167_v37 = vmul.f32 %v4217_v59, %v4209_v45 }
0x107f   :  { %3997 = vmatmul.mubr.msk.f32.vlgmr.msra.gmra.mrb[16].mxu0 %vm423_vm3, %v2355_v62 }
0x1080   :  { %4005 = vmatpush3.msk.msra.mxu0 %vm684_vm8, %v2171_v55  ;;  %4006 = vmatprep.mubr.msk.f32.mxu0 %vm4246_vm4, %v4238_v15 }
0x1081   :  { %4014 = vmatprep.subr.mxu0 %v4238_v15 }
0x1087   :  { %4007 = vmatmul.mubr.msk.f32.vlgmr.msra.gmra.mrb[16].mxu0 %vm423_vm3, %v2167_v37 }
0x1088   :  { %4016 = vmatprep.mubr.msk.f32.mxu0 %vm4246_vm4, %v4238_v15 }
0x109e   :  { %v2348_v52 = vpop.xlane.xlu1 %2347 }
0x109f   :  { %4218 = vrcp.f32 %v2348_v52 }
0x10a0   :  { %4220 = vrcp.f32 %v2160_v28 }
0x10a2   :  { %v2731_v1 = vpop.permute.xlu1 %2730 }
0x10a3   :  { %4015 = vmatpush3.xpose.msk.msra.mxu0 %vm26_vm0, %v2731_v1 }
0x10a4   :  { %4024 = vmatprep.subr.mxu0 %v4238_v15 }
0x10a6   :  { %v2729_v56 = vpop.permute.xlu1 %2728 }
0x10a7   :  { %4017 = vmatmul.mubr.msk.f32.vlgmr.msra.gmra.mrb[18].mxu0 %vm26_vm0, %v2729_v56 }
0x10a8   :  { %4025 = vmatpush3.msk.msra.mxu0 %vm4486_vm11, %v2171_v55  ;;  %4026 = vmatprep.mubr.msk.f32.mxu0 %vm4246_vm4, %v4238_v15 }
0x10a9   :  { %v4219_v61 = vpop.eup %4218 }
0x10aa   :  { %v2354_v2 = vmul.f32 %v4219_v61, %v4213_v50  ;;  %v4221_v58 = vpop.eup %4220 }
0x10ab   :  { %v2166_v3 = vmul.f32 %v4221_v58, %v4207_v25  ;;  %v3745_v25 = vld [vmem:[%s4835_s4 + $0x5c] ss:$0 sm:$0xff] }
0x10ac   :  { %3992 = vmatmul.mubr.msk.f32.vlgmr.msra.gmra.mrb[20].mxu1 %vm423_vm3, %v2354_v2 }
0x10ad   :  { %4000 = vmatpush3.msk.msra.mxu1 %vm684_vm8, %v4649_v35  ;;  %4001 = vmatprep.mubr.msk.f32.mxu1 %vm4246_vm4, %v4238_v15 }
0x10ae   :  { %4009 = vmatprep.subr.mxu1 %v4238_v15 }
0x10b4   :  { %4002 = vmatmul.mubr.msk.f32.vlgmr.msra.gmra.mrb[20].mxu1 %vm423_vm3, %v2166_v3 }
0x10b5   :  { %4010 = vmatpush3.xpose.msk.msra.mxu1 %vm26_vm0, %v2653_v57  ;;  %4011 = vmatprep.mubr.msk.f32.mxu1 %vm4246_vm4, %v4238_v15 }
0x10b6   :  { %4019 = vmatprep.subr.mxu1 %v4238_v15 }
0x10b8   :  { %4012 = vmatmul.mubr.msk.f32.vlgmr.msra.gmra.mrb[22].mxu1 %vm26_vm0, %v2651_v6  ;;  %vm3376_vm0 = vcmask 56320  }
0x10b9   :  { %4020 = vmatpush3.msk.msra.mxu1 %vm4486_vm11, %v4649_v35  ;;  %4021 = vmatprep.mubr.msk.f32.mxu1 %vm4246_vm4, %v4238_v15  ;;  %v3742_v35 = vld [vmem:[%s4835_s4 + $0x50] sm:$0xff] }
0x10ba   :  { %v4097_v38 = vpack.c.bf16 %v3743_v36, %v3742_v35 }
0x10bc   :  { %4099 = vmatprep.subr.msk.bf16.mxu1 %vm4525_vm14, %v4097_v38 }
0x117a   :  { %v2802_v7 = vpop.f32.mrb[18].mxu0 }
0x117b   :  { %v2807_v8 = vmul.f32 0.5, %v2802_v7  ;;  %v4018_v9 = vpop.f32.mrb[19].mxu0 }
0x117d   :  { %v2811_v10 = vsel %vm423_vm3, %v2807_v8, -inf }
0x117e   :  { %2812 = vmax.xlane.f32.xlu1 %v2811_v10  ;;  %v3751_v10 = vld [vmem:[%s4836_s3 + $0x10] sm:$0xff] }
0x117f   :  { %4036 = vmatprep.subr.mxu0 %v3751_v10 }
0x118b   :  { %v2724_v11 = vpop.f32.mrb[22].mxu1 }
0x118c   :  { %v2806_v54 = vmul.f32 0.5, %v2724_v11  ;;  %v4013_v12 = vpop.f32.mrb[23].mxu1  ;;  %v3756_v11 = vld [vmem:[%s4835_s4 + $0x5e] sm:$0xff] }
0x118e   :  { %v2808_v14 = vsel %vm423_vm3, %v2806_v54, -inf }
0x118f   :  { %2809 = vmax.xlane.f32.xlu0 %v2808_v14 }
0x120b   :  { %v2813_v29 = vpop.xlane.xlu1 %2812 }
0x120c   :  { %v2815_v16 = vsub.f32 %v2807_v8, %v2813_v29 }
0x120e   :  { %v2818_v18 = vmul.f32 1.442695, %v2815_v16 }
0x121c   :  { %v2810_v17 = vpop.xlane.xlu0 %2809 }
0x121d   :  { %v2814_v63 = vsub.f32 %v2806_v54, %v2810_v17  ;;  %v3757_v54 = vld [vmem:[%s4835_s4 + $0x66] sm:$0xff] }
0x121e   :  { %v4103_v12 = vpack.c.bf16 %v3757_v54, %v3756_v11 }
0x121f   :  { %v2816_v19 = vmul.f32 1.442695, %v2814_v63 }
0x1221   :  { %4222 = vpow2.f32 %v2816_v19 }
0x1222   :  { %4224 = vpow2.f32 %v2818_v18 }
0x122b   :  { %v4223_v20 = vpop.eup %4222 }
0x122c   :  { %v2820_v21 = vsel %vm423_vm3, %v4223_v20, 0.0  ;;  %v4225_v22 = vpop.eup %4224 }
0x122d   :  { %2821 = vadd.xlane.f32.xlu0 %v2820_v21  ;;  %v2823_v24 = vsel %vm423_vm3, %v4225_v22, 0.0 }
0x1231   :  { %2824 = vadd.xlane.f32.xlu0 %v2823_v24 }
0x12ba   :  { %v2822_v26 = vpop.xlane.xlu0 %2821 }
0x12bb   :  { %4226 = vrcp.f32 %v2822_v26 }
0x12be   :  { %v2825_v27 = vpop.xlane.xlu0 %2824 }
0x12bf   :  { %4228 = vrcp.f32 %v2825_v27 }
0x12c5   :  { %v4227_v40 = vpop.eup %4226 }
0x12c6   :  { %v2828_v31 = vmul.f32 %v4227_v40, %v4223_v20 }
0x12c8   :  { %4022 = vmatmul.mubr.msk.f32.vlgmr.msra.gmra.mrb[20].mxu1 %vm423_vm3, %v2828_v31 }
0x12c9   :  { %v4229_v32 = vpop.eup %4228  ;;  %4102 = vmatpush3.bf16.msk.msra.mxu1 %vm4525_vm14, %v4097_v38 }
0x12ca   :  { %v2829_v34 = vmul.f32 %v4229_v32, %v4225_v22  ;;  %4104 = vmatprep.subr.bf16.mxu1 %v4103_v12 }
0x12cc   :  { %4027 = vmatmul.mubr.msk.f32.vlgmr.msra.gmra.mrb[16].mxu0 %vm423_vm3, %v2829_v34 }
0x12cd   :  { %4037 = vmatpush3.msra.mxu0 %v3751_v10 }
0x12ce   :  { %4052 = vmatprep.subr.mxu0 %v4238_v15 }
0x139b   :  { %v2901_v39 = vpop.f32.mrb[20].mxu1 }
0x139c   :  { %v4023_v42 = vpop.f32.mrb[21].mxu1  ;;  %4033 = vmatprep.mubr.msk.f32.mxu1 %vm1511_vm15, %v2901_v39 }
0x139d   :  { %v3749_v42 = vld [vmem:[%s4835_s4 + $0x7e] sm:$0xff] }
0x139f   :  { %v2974_v23 = vpop.f32.mrb[16].mxu0 }
0x13a0   :  { %v4028_v43 = vpop.f32.mrb[17].mxu0  ;;  %4034 = vmatmul.mubr.msk.f32.vlgmr.msra.gmra.mrb[24].mxu1 %vm1511_vm15, %v2974_v23 }
0x13a1   :  { %4106 = vmatpush3.bf16.msra.mxu1 %v4103_v12 }
0x1473   :  { %v4035_v44 = vpop.f32.mrb[24].mxu1 }
0x1474   :  { %v3069_v45 = vadd.f32 %v4035_v44, %v3745_v25  ;;  %v3063_v46 = vpop.f32.mrb[25].mxu1 }
0x1475   :  { %v3064_v47 = vadd.f32 %v3745_v25, %v3063_v46 }
0x1476   :  { %v3073_v48 = vadd.f32 %v3069_v45, %v4594_v0  ;;  %v3750_v45 = vld [vmem:[%s4835_s4 + $0x86] sm:$0xff] }
0x1477   :  { %v3072_v30 = vadd.f32 %v3064_v47, %v4592_v41 }
0x1478   :  { %v3077_v49 = vsel %vm423_vm3, %v3073_v48, 0.0 }
0x1479   :  { %3078 = vadd.xlane.f32.xlu0 %v3077_v49  ;;  %v3074_v33 = vsel %vm423_vm3, %v3072_v30, 0.0  ;;  %v3759_v49 = vld [vmem:[%s4835_s4 + $0x76] sm:$0xff] }
0x147a   :  { %3075 = vadd.xlane.f32.xlu1 %v3074_v33 }
0x1506   :  { %v3079_v50 = vpop.xlane.xlu0 %3078 }
0x1507   :  { %v3081_v5 = vmul.f32 0.125, %v3079_v50  ;;  %v3076_v51 = vpop.xlane.xlu1 %3075  ;;  %v3753_v50 = vld [vmem:[%s4836_s3 + $0x18] ss:$0 sm:$0xff] }
0x1508   :  { %v3080_v53 = vmul.f32 0.125, %v3076_v51 }
0x1509   :  { %v3088_v55 = vrot.slane %v3081_v5, 4 }
0x150a   :  { %v3082_v60 = vrot.slane %v3080_v53, 4 }
0x150b   :  { %v3089_v62 = vadd.f32 %v3088_v55, %v3081_v5 }
0x150c   :  { %v3083_v59 = vadd.f32 %v3082_v60, %v3080_v53 }
0x150d   :  { %v3090_v37 = vrot.slane %v3089_v62, 2 }
0x150e   :  { %v3084_v28 = vrot.slane %v3083_v59, 2 }
0x150f   :  { %v3091_v57 = vadd.f32 %v3090_v37, %v3089_v62 }
0x1510   :  { %v3085_v0 = vadd.f32 %v3084_v28, %v3083_v59  ;;  %v3761_v59 = vld [vmem:[%s4835_s4 + $0x5d] ss:$0 sm:$0xff] }
0x1511   :  { %v3092_v52 = vrot.slane %v3091_v57, 1 }
0x1512   :  { %v3086_v41 = vrot.slane %v3085_v0, 1 }
0x1513   :  { %v3093_v1 = vadd.f32 %v3092_v52, %v3091_v57 }
0x1514   :  { %v3087_v56 = vadd.f32 %v3086_v41, %v3085_v0 }
0x1515   :  { %v3095_v61 = vmul.f32 0.125, %v3093_v1 }
0x1516   :  { %v3094_v2 = vmul.f32 0.125, %v3087_v56 }
0x1517   :  { %v3097_v58 = vsub.f32 %v3073_v48, %v3095_v61 }
0x1518   :  { %v3096_v3 = vsub.f32 %v3072_v30, %v3094_v2  ;;  %v3758_v30 = vld [vmem:[%s4835_s4 + $0x6e] sm:$0xff] }
0x1519   :  { %v3099_v6 = vmul.f32 %v3097_v58, %v3097_v58  ;;  %v4107_v33 = vpack.c.bf16 %v3759_v49, %v3758_v30 }
0x151a   :  { %v3098_v7 = vmul.f32 %v3096_v3, %v3096_v3 }
0x151b   :  { %v3103_v8 = vsel %vm423_vm3, %v3099_v6, 0.0  ;;  %4108 = vmatprep.subr.bf16.mxu1 %v4107_v33 }
0x151c   :  { %3104 = vadd.xlane.f32.xlu0 %v3103_v8  ;;  %v3100_v9 = vsel %vm423_vm3, %v3098_v7, 0.0  ;;  %4110 = vmatpush3.bf16.msra.mxu1 %v4107_v33 }
0x151d   :  { %3101 = vadd.xlane.f32.xlu1 %v3100_v9 }
0x15a9   :  { %v3105_v14 = vpop.xlane.xlu0 %3104 }
0x15aa   :  { %v3107_v29 = vmul.f32 0.125, %v3105_v14  ;;  %v3102_v16 = vpop.xlane.xlu1 %3101 }
0x15ab   :  { %v3106_v17 = vmul.f32 0.125, %v3102_v16 }
0x15ac   :  { %v3114_v63 = vrot.slane %v3107_v29, 4 }
0x15ad   :  { %v3108_v18 = vrot.slane %v3106_v17, 4 }
0x15ae   :  { %v3115_v19 = vadd.f32 %v3114_v63, %v3107_v29 }
0x15af   :  { %v3109_v20 = vadd.f32 %v3108_v18, %v3106_v17 }
0x15b0   :  { %v3116_v21 = vrot.slane %v3115_v19, 2 }
0x15b1   :  { %v3110_v22 = vrot.slane %v3109_v20, 2 }
0x15b2   :  { %v3117_v24 = vadd.f32 %v3116_v21, %v3115_v19 }
0x15b3   :  { %v3111_v26 = vadd.f32 %v3110_v22, %v3109_v20 }
0x15b4   :  { %v3118_v27 = vrot.slane %v3117_v24, 1 }
0x15b5   :  { %v3112_v40 = vrot.slane %v3111_v26, 1 }
0x15b6   :  { %v3119_v31 = vadd.f32 %v3118_v27, %v3117_v24 }
0x15b7   :  { %v3113_v32 = vadd.f32 %v3112_v40, %v3111_v26 }
0x15b8   :  { %v3121_v34 = vmul.f32 0.125, %v3119_v31 }
0x15b9   :  { %v3120_v35 = vmul.f32 0.125, %v3113_v32 }
0x15ba   :  { %v3123_v36 = vadd.f32 1e-05, %v3121_v34 }
0x15bb   :  { %v3122_v38 = vadd.f32 1e-05, %v3120_v35 }
0x15bc   :  { %4230 = vrsqrt.f32 %v3123_v36 }
0x15bd   :  { %4232 = vrsqrt.f32 %v3122_v38 }
0x15c6   :  { %v4231_v39 = vpop.eup %4230 }
0x15c7   :  { %v4233_v23 = vpop.eup %4232  ;;  %v3127_v43 = vmul.f32 %v4231_v39, %v3097_v58 }
0x15c8   :  { %v3126_v25 = vmul.f32 %v4233_v23, %v3096_v3 }
0x15c9   :  { %v3130_v44 = vmul.f32 %v3749_v42, %v3127_v43 }
0x15ca   :  { %v3129_v46 = vmul.f32 %v3749_v42, %v3126_v25 }
0x15cb   :  { %v3133_v48 = vadd.f32 %v3750_v45, %v3130_v44 }
0x15cc   :  { %v3132_v47 = vadd.f32 %v3750_v45, %v3129_v46 }
0x15ce   :  { %4038 = vmatprep.mubr.msk.f32.mxu0 %vm423_vm3, %v3132_v47 }
0x15cf   :  { %4039 = vmatmul.mubr.msk.f32.vlgmr.msra.gmra.mrb[20].mxu0 %vm423_vm3, %v3133_v48 }
0x15d0   :  { %4054 = vmatprep.mubr.msk.f32.mxu0 %vm4246_vm4, %v4238_v15 }
0x16a2   :  { %v4040_v5 = vpop.f32.mrb[20].mxu0 }
0x16a3   :  { %v3219_v51 = vadd.f32 %v4040_v5, %v3753_v50  ;;  %v3213_v53 = vpop.f32.mrb[21].mxu0 }
0x16a4   :  { %v3214_v55 = vadd.f32 %v3753_v50, %v3213_v53  ;;  %v3764_v50 = vld [vmem:[%s4835_s4 + $0x8e] sm:$0xff]  ;;  %v3765_v53 = vld [vmem:[%s4835_s4 + $0x96] sm:$0xff] }
0x16a5   :  { %v3223_v62 = vmax.f32 %v3219_v51, 0.0 }
0x16a6   :  { %v3222_v60 = vmax.f32 %v3214_v55, 0.0 }
0x16a8   :  { %4049 = vmatprep.mubr.msk.f32.mxu1 %vm1758_vm1, %v3222_v60 }
0x16a9   :  { %4050 = vmatmul.mubr.msk.f32.vlgmr.msra.gmra.mrb[26].mxu1 %vm1758_vm1, %v3223_v62 }
0x16aa   :  { %4080 = vmatprep.mubr.msk.f32.mxu1 %vm4246_vm4, %v4238_v15 }
0x177c   :  { %v4051_v37 = vpop.f32.mrb[26].mxu1 }
0x177d   :  { %v3311_v28 = vadd.f32 %v4051_v37, %v3761_v59  ;;  %v3305_v57 = vpop.f32.mrb[27].mxu1 }
0x177e   :  { %v3306_v0 = vadd.f32 %v3761_v59, %v3305_v57 }
0x177f   :  { %v3315_v52 = vadd.f32 %v3311_v28, %v3133_v48 }
0x1780   :  { %v3314_v41 = vadd.f32 %v3306_v0, %v3132_v47  ;;  %v3386_v0 = vld [vmem:[%s4837_s5] sm:$0xff] }
0x1781   :  { %v3319_v1 = vsel %vm423_vm3, %v3315_v52, 0.0  ;;  %4053 = vmatpush3.msra.mxu0 %v3386_v0 }
0x1782   :  { %3320 = vadd.xlane.f32.xlu0 %v3319_v1  ;;  %v3316_v56 = vsel %vm423_vm3, %v3314_v41, 0.0 }
0x1783   :  { %3317 = vadd.xlane.f32.xlu1 %v3316_v56 }
0x180f   :  { %v3321_v61 = vpop.xlane.xlu0 %3320 }
0x1810   :  { %v3323_v2 = vmul.f32 0.125, %v3321_v61  ;;  %v3318_v58 = vpop.xlane.xlu1 %3317 }
0x1811   :  { %v3322_v3 = vmul.f32 0.125, %v3318_v58  ;;  %v3478_v58 = vld [vmem:[%s4837_s5 + $0x11] sm:$0xff] }
0x1812   :  { %v3330_v6 = vrot.slane %v3323_v2, 4 }
0x1813   :  { %v3324_v7 = vrot.slane %v3322_v3, 4 }
0x1814   :  { %v3331_v8 = vadd.f32 %v3330_v6, %v3323_v2  ;;  %v3477_v2 = vld [vmem:[%s4837_s5 + $0x9] sm:$0xff] }
0x1815   :  { %v3325_v9 = vadd.f32 %v3324_v7, %v3322_v3 }
0x1816   :  { %v3332_v10 = vrot.slane %v3331_v8, 2 }
0x1817   :  { %v3326_v11 = vrot.slane %v3325_v9, 2 }
0x1818   :  { %v3333_v54 = vadd.f32 %v3332_v10, %v3331_v8  ;;  %v4112_v8 = vpack.c.bf16 %v3478_v58, %v3477_v2 }
0x1819   :  { %v3327_v12 = vadd.f32 %v3326_v11, %v3325_v9  ;;  %v3481_v11 = vld [vmem:[%s4837_s5 + $0x29] sm:$0xff] }
0x181a   :  { %v3334_v14 = vrot.slane %v3333_v54, 1 }
0x181b   :  { %v3328_v29 = vrot.slane %v3327_v12, 1 }
0x181c   :  { %v3335_v16 = vadd.f32 %v3334_v14, %v3333_v54  ;;  %v3482_v54 = vld [vmem:[%s4837_s5 + $0x31] sm:$0xff]  ;;  %v3483_v14 = vld [vmem:[%s4837_s5 + $0x39] sm:$0x3] }
0x181d   :  { %v3329_v17 = vadd.f32 %v3328_v29, %v3327_v12  ;;  %v4118_v12 = vpack.c.bf16 %v3482_v54, %v3481_v11  ;;  %v3766_v29 = vld [vmem:[%s4837_s5 + $0x8] ss:$0 sm:$0xff] }
0x181e   :  { %v3337_v63 = vmul.f32 0.125, %v3335_v16 }
0x181f   :  { %v3336_v18 = vmul.f32 0.125, %v3329_v17 }
0x1820   :  { %v3339_v19 = vsub.f32 %v3315_v52, %v3337_v63  ;;  %v4254_v52 = vmov 0.0|0.0  }
0x1821   :  { %v3338_v20 = vsub.f32 %v3314_v41, %v3336_v18  ;;  %4111 = vmatprep.subr.bf16.mxu0 %v4254_v52  ;;  %4120 = vmatprep.subr.bf16.mxu1 %v4254_v52  ;;  %v3396_v41 = vsub.s32 %v4311_v13, %v4297_v4  ;;  %v3479_v4 = vld [vmem:[%s4837_s5 + $0x19] sm:$0xff]  ;;  %v3480_v13 = vld [vmem:[%s4837_s5 + $0x21] sm:$0xff] }
0x1822   :  { %v3341_v21 = vmul.f32 %v3339_v19, %v3339_v19  ;;  %v4115_v10 = vpack.c.bf16 %v3480_v13, %v3479_v4 }
0x1823   :  { %v3340_v22 = vmul.f32 %v3338_v20, %v3338_v20 }
0x1824   :  { %v3345_v24 = vsel %vm423_vm3, %v3341_v21, 0.0 }
0x1825   :  { %3346 = vadd.xlane.f32.xlu0 %v3345_v24  ;;  %v3342_v26 = vsel %vm423_vm3, %v3340_v22, 0.0  ;;  %v3570_v22 = vld [vmem:[%s4837_s5 + $0x4c] sm:$0xf]  ;;  %v3768_v24 = vld [vmem:[%s4837_s5 + $0x3b] ss:$0 sm:$0xff] }
0x1826   :  { %3343 = vadd.xlane.f32.xlu1 %v3342_v26 }
0x18b2   :  { %v3347_v27 = vpop.xlane.xlu0 %3346 }
0x18b3   :  { %v3349_v40 = vmul.f32 0.125, %v3347_v27  ;;  %v3344_v31 = vpop.xlane.xlu1 %3343 }
0x18b4   :  { %v3348_v32 = vmul.f32 0.125, %v3344_v31 }
0x18b5   :  { %v3356_v34 = vrot.slane %v3349_v40, 4 }
0x18b6   :  { %v3350_v35 = vrot.slane %v3348_v32, 4 }
0x18b7   :  { %v3357_v36 = vadd.f32 %v3356_v34, %v3349_v40 }
0x18b8   :  { %v3351_v38 = vadd.f32 %v3350_v35, %v3348_v32 }
0x18b9   :  { %v3358_v39 = vrot.slane %v3357_v36, 2 }
0x18ba   :  { %v3352_v42 = vrot.slane %v3351_v38, 2 }
0x18bb   :  { %v3359_v23 = vadd.f32 %v3358_v39, %v3357_v36 }
0x18bc   :  { %v3353_v43 = vadd.f32 %v3352_v42, %v3351_v38 }
0x18bd   :  { %v3360_v25 = vrot.slane %v3359_v23, 1 }
0x18be   :  { %v3354_v44 = vrot.slane %v3353_v43, 1 }
0x18bf   :  { %v3361_v45 = vadd.f32 %v3360_v25, %v3359_v23 }
0x18c0   :  { %v3355_v46 = vadd.f32 %v3354_v44, %v3353_v43 }
0x18c1   :  { %v3363_v47 = vmul.f32 0.125, %v3361_v45 }
0x18c2   :  { %v3362_v48 = vmul.f32 0.125, %v3355_v46 }
0x18c3   :  { %v3365_v30 = vadd.f32 1e-05, %v3363_v47 }
0x18c4   :  { %v3364_v49 = vadd.f32 1e-05, %v3362_v48 }
0x18c5   :  { %4234 = vrsqrt.f32 %v3365_v30 }
0x18c6   :  { %4236 = vrsqrt.f32 %v3364_v49 }
0x18cf   :  { %v4235_v33 = vpop.eup %4234 }
0x18d0   :  { %v4237_v5 = vpop.eup %4236  ;;  %v3369_v51 = vmul.f32 %v4235_v33, %v3339_v19  ;;  %v3568_v19 = vld [vmem:[%s4837_s5 + $0x3c] sm:$0xff] }
0x18d1   :  { %v3368_v55 = vmul.f32 %v4237_v5, %v3338_v20  ;;  %v3569_v20 = vld [vmem:[%s4837_s5 + $0x44] sm:$0xff] }
0x18d2   :  { %v3372_v60 = vmul.f32 %v3764_v50, %v3369_v51  ;;  %v4121_v21 = vpack.c.bf16 %v3569_v20, %v3568_v19 }
0x18d3   :  { %v3371_v62 = vmul.f32 %v3764_v50, %v3368_v55 }
0x18d4   :  { %v3375_v59 = vadd.f32 %v3765_v53, %v3372_v60  ;;  %4122 = vmatpush3.bf16.msra.mxu1 %v4121_v21 }
0x18d5   :  { %v3374_v37 = vadd.f32 %v3765_v53, %v3371_v62  ;;  %4078 = vmatprep.subr.mxu1 %v4238_v15 }
0x18d6   :  { %v3380_v28 = vsel %vm3376_vm0, %v3375_v59, 0.0 }
0x18d7   :  { %3381 = vadd.xlane.f32.xlu0 %v3380_v28  ;;  %v3377_v57 = vsel %vm3376_vm0, %v3374_v37, 0.0 }
0x18d8   :  { %3378 = vadd.xlane.f32.xlu1 %v3377_v57  ;;  %4079 = vmatpush3.msk.msra.mxu1 %vm1518_vm12, %v3570_v22 }
0x1964   :  { %v3382_v1 = vpop.xlane.xlu0 %3381 }
0x1965   :  { %v3385_v56 = vmul.f32 0.14285715, %v3382_v1  ;;  %v3379_v61 = vpop.xlane.xlu1 %3378 }
0x1966   :  { %v3384_v3 = vmul.f32 0.14285715, %v3379_v61 }
0x1967   :  { %v3401_v6 = vrot.slane %v3385_v56, %v3396_v41 }
0x1968   :  { %v3397_v7 = vrot.slane %v3384_v3, %v3396_v41 }
0x196a   :  { %v3403_v9 = vsel %vm3402_vm2, %v3401_v6, %v3397_v7 }
0x196b   :  { %4055 = vmatmul.mubr.msk.f32.vlgmr.msra.gmra.mrb[22].mxu0 %vm423_vm3, %v3403_v9  ;;  %vm3493_vm3 = vcmask 1041408  }
0x196c   :  { %4113 = vmatpush3.bf16.msra.mxu0 %v4112_v8  ;;  %4071 = vmatprep.mubr.msk.f32.mxu0 %vm4246_vm4, %v4238_v15  ;;  %vm3489_vm4 = vcmask 408576  }
0x196d   :  { %4114 = vmatprep.subr.bf16.mxu0 %v4254_v52 }
0x1970   :  { %4116 = vmatpush3.bf16.msra.mxu0 %v4115_v10 }
0x1971   :  { %4117 = vmatprep.subr.bf16.mxu0 %v4254_v52 }
0x1974   :  { %4119 = vmatpush3.bf16.msra.mxu0 %v4118_v12 }
0x1975   :  { %4069 = vmatprep.subr.mxu0 %v4238_v15  ;;  %v3771_v15 = vld [vmem:[%s4837_s5 + $0x50] ss:$0 sm:$0xff] }
0x1978   :  { %4070 = vmatpush3.msk.msra.mxu0 %vm3493_vm3, %v3483_v14 }
0x1a3e   :  { %v3472_v16 = vpop.f32.mrb[22].mxu0 }
0x1a3f   :  { %v3473_v17 = vadd.f32 %v3766_v29, %v3472_v16  ;;  %v4056_v63 = vpop.f32.mrb[23].mxu0 }
0x1a41   :  { %v3476_v18 = vmax.f32 %v3473_v17, 0.0 }
0x1a43   :  { %4072 = vmatmul.mubr.msk.f32.vlgmr.msra.gmra.mrb[24].mxu0 %vm3489_vm4, %v3476_v18 }
0x1b16   :  { %v3563_v26 = vpop.f32.mrb[24].mxu0 }
0x1b17   :  { %v3564_v27 = vadd.f32 %v3768_v24, %v3563_v26  ;;  %v4073_v40 = vpop.f32.mrb[25].mxu0 }
0x1b19   :  { %v3567_v31 = vmax.f32 %v3564_v27, 0.0 }
0x1b1b   :  { %4081 = vmatmul.mubr.msk.f32.vlgmr.msra.gmra.mrb[28].mxu1 %vm3576_vm5, %v3567_v31 }
0x1bee   :  { %v3649_v32 = vpop.f32.mrb[28].mxu1 }
0x1bef   :  { %v3650_v34 = vadd.f32 %v3771_v15, %v3649_v32  ;;  %v4082_v35 = vpop.f32.mrb[29].mxu1 }
0x1bf1   :  { %3655 = vperm.xlu1 %4164, %v3650_v34  }
0x1c70   :  { %v3656_v36 = vpop.permute.xlu1 %3655 }
0x1c71   :  { %3659 = vst.msk [vmem:[%s4838_s6] sm:$0x3] %vm3658_vm6, %v3656_v36 }

</bundles_post_ra>
